<compile_context>
chip_gen: v7x
topology: tpu7x:2x2x1
jax: 0.10.0
libtpu: 0.0.40
codegen_flags: <defaults>
</compile_context>

<pallas_src>
import math
from functools import partial

import jax
import jax.numpy as jnp
from jax.experimental import pallas as pl
from jax.experimental.pallas import tpu as pltpu

NUM_GROUPS = 32
EPS = 1e-6


def _pick_tile(n, cap):
    """Largest multiple-of-128 divisor of n that is <= cap (n itself if n < 128)."""
    best = None
    t = 128
    while t <= min(n, cap):
        if n % t == 0:
            best = t
        t += 128
    return best if best is not None else n


def _vmem_limit_bytes():
    try:
        cap = pltpu.get_tpu_info().vmem_capacity_bytes
    except Exception:
        cap = 64 * 1024 * 1024  # conservative (v7x-sized) fallback
    # ~75% of physical VMEM, capped < 100 MiB: 96 MiB on v5e/v6e, 48 MiB on v7x.
    return int(min(cap * 3 // 4, 100 * 1024 * 1024))


def _p3_vmem_bytes(c, tq, tk):
    """Rough pass-3 VMEM footprint: double-buffered streams + scratch + temporaries."""
    return (2 * c * tq * 2              # q (bf16, 2x)
            + 2 * 2 * c * tk * 2        # k + v (bf16, 2x)
            + 2 * c * tq * 4            # residual x tile (f32, 2x)
            + 2 * c * tq * 4            # output tile (f32, 2x)
            + 2 * (c * c * 2 + c * 4)   # wp (bf16) + bp (f32), 2x
            + c * tq * 4 + 2 * tq * 4   # acc + m + l scratch
            + tk * tq * 6)              # score temporaries (f32 s + bf16 p)


def _choose_p3_tiles(c, hw_pad, budget):
    # Prefer K/V fully resident across query tiles (TK = HW_pad): eliminates
    # the dominant per-query-tile KV re-read.  Otherwise fall back through
    # progressively smaller (TQ, TK) pairs that fit the VMEM budget.
    candidates = [(1024, hw_pad), (512, hw_pad)]
    for tq_cap in (1024, 512, 256, 128):
        for tk_cap in (2048, 1024, 512, 256, 128):
            candidates.append((tq_cap, tk_cap))
    for tq_cap, tk_cap in candidates:
        tq = _pick_tile(hw_pad, tq_cap)
        tk = _pick_tile(hw_pad, tk_cap)
        if _p3_vmem_bytes(c, tq, tk) <= budget:
            return tq, tk
    return _pick_tile(hw_pad, 128), _pick_tile(hw_pad, 128)


# --------------------------------------------------------------------------
# Pass 1: GroupNorm statistics -> per-channel scale/shift (gamma/beta folded).
# grid = (B, nS); spatial axis is a reduction ("arbitrary", last).
# --------------------------------------------------------------------------
def _gn_stats_kernel(x_ref, member_ref, gamma_ref, beta_ref,
                     scale_ref, shift_ref, sum_ref, sum2_ref, *, hw):
    si = pl.program_id(1)

    @pl.when(si == 0)
    def _():
        sum_ref[...] = jnp.zeros(sum_ref.shape, sum_ref.dtype)
        sum2_ref[...] = jnp.zeros(sum2_ref.shape, sum2_ref.dtype)

    xt = x_ref[...].astype(jnp.float32)                       # (C, TS)
    sum_ref[...] += jnp.sum(xt, axis=1, keepdims=True)        # (C, 1)
    sum2_ref[...] += jnp.sum(xt * xt, axis=1, keepdims=True)  # (C, 1)

    @pl.when(si == pl.num_programs(1) - 1)
    def _():
        c = sum_ref.shape[0]
        cs = c // NUM_GROUPS
        n = jnp.float32(hw * cs)            # true (unpadded) element count
        member = member_ref[...]                                         # (C, G)
        g_sum = jnp.sum(member * sum_ref[...], axis=0, keepdims=True)    # (1, G)
        g_sum2 = jnp.sum(member * sum2_ref[...], axis=0, keepdims=True)  # (1, G)
        g_mean = g_sum / n
        # clamp variance >= 0 (E[x^2]-E[x]^2 in f32 can go slightly negative)
        g_var = jnp.maximum(g_sum2 / n - g_mean * g_mean, 0.0)
        mean_c = jnp.sum(member * g_mean, axis=1, keepdims=True)         # (C, 1)
        var_c = jnp.sum(member * g_var, axis=1, keepdims=True)           # (C, 1)
        rstd_c = jax.lax.rsqrt(var_c + EPS)
        sc = rstd_c * gamma_ref[...]
        scale_ref[...] = sc
        shift_ref[...] = beta_ref[...] - mean_c * sc


# --------------------------------------------------------------------------
# Pass 2: normalize + fused q/k/v 1x1 conv projections (bf16 MXU, f32 acc).
# --------------------------------------------------------------------------
def _qkv_kernel(x_ref, scale_ref, shift_ref, wqkv_ref, bqkv_ref,
                q_ref, k_ref, v_ref):
    c = q_ref.shape[0]
    h = x_ref[...].astype(jnp.float32) * scale_ref[...] + shift_ref[...]  # (C, TS)
    hb = h.astype(jnp.bfloat16)
    qkv = jnp.dot(wqkv_ref[...], hb,
                  preferred_element_type=jnp.float32) + bqkv_ref[...]     # (3C, TS)
    q_ref[...] = qkv[0:c].astype(q_ref.dtype)
    k_ref[...] = qkv[c:2 * c].astype(k_ref.dtype)
    v_ref[...] = qkv[2 * c:3 * c].astype(v_ref.dtype)


# --------------------------------------------------------------------------
# Pass 3: flash attention (online softmax) + proj_out + residual, fused.
# Layout: channels/keys on sublanes, queries on lanes.
# --------------------------------------------------------------------------
def _flash_attn_kernel(q_ref, k_ref, v_ref, xres_ref, wp_ref, bp_ref,
                       o_ref, m_sc, l_sc, acc_sc, *, hw, mask_keys):
    ki = pl.program_id(2)
    nk = pl.num_programs(2)

    @pl.when(ki == 0)
    def _():
        m_sc[...] = jnp.full(m_sc.shape, -jnp.inf, dtype=m_sc.dtype)
        l_sc[...] = jnp.zeros(l_sc.shape, l_sc.dtype)
        acc_sc[...] = jnp.zeros(acc_sc.shape, acc_sc.dtype)

    q = q_ref[...]                 # (C, TQ) bf16 (softmax scale folded into wq/bq)
    k = k_ref[...]                 # (C, TK) bf16
    v = v_ref[...]                 # (C, TK) bf16

    # scores, keys on sublanes / queries on lanes: s[key, query] = k . q
    s = jax.lax.dot_general(
        k, q, dimension_numbers=(((0,), (0,)), ((), ())),
        preferred_element_type=jnp.float32)                     # (TK, TQ)

    if mask_keys:
        tk = s.shape[0]
        key_idx = ki * tk + jax.lax.broadcasted_iota(jnp.int32, s.shape, 0)
        s = jnp.where(key_idx < hw, s, -jnp.inf)

    m_prev = m_sc[...]                                          # (1, TQ)
    m_new = jnp.maximum(m_prev, jnp.max(s, axis=0, keepdims=True))
    alpha = jnp.exp(m_prev - m_new)                             # (1, TQ)
    p = jnp.exp(s - m_new)                                      # (TK, TQ)
    l_sc[...] = alpha * l_sc[...] + jnp.sum(p, axis=0, keepdims=True)
    acc_sc[...] = alpha * acc_sc[...] + jnp.dot(
        v, p.astype(jnp.bfloat16), preferred_element_type=jnp.float32)  # (C, TQ)
    m_sc[...] = m_new

    @pl.when(ki == nk - 1)
    def _():
        inv_l = pl.reciprocal(l_sc[...], approx=True)           # (1, TQ)
        a = (acc_sc[...] * inv_l).astype(jnp.bfloat16)          # (C, TQ)
        out = jnp.dot(wp_ref[...], a,
                      preferred_element_type=jnp.float32) + bp_ref[...]
        o_ref[...] = (xres_ref[...].astype(jnp.float32) + out).astype(o_ref.dtype)


# --------------------------------------------------------------------------
# Wrapper
# --------------------------------------------------------------------------
def memory_efficient_attn_block(x_nchw, params, *, tq=None, tk=None, ts=None):
    """x_nchw: (B, C, H, W) float32.  Returns (B, C, H, W)."""
    B, C, H, W = x_nchw.shape
    assert C % NUM_GROUPS == 0, "GroupNorm(32) requires C % 32 == 0"
    HW = H * W
    HW_pad = ((HW + 127) // 128) * 128          # lane-dense spatial extent
    x = x_nchw.reshape(B, C, HW)                # free reshape, no transpose
    if HW_pad != HW:
        x = jnp.pad(x, ((0, 0), (0, 0), (0, HW_pad - HW)))

    vmem_limit = _vmem_limit_bytes()
    budget = int(vmem_limit * 0.7)

    TS = _pick_tile(HW_pad, ts if ts is not None else 1024)
    auto_tq, auto_tk = (None, None)
    if tq is None or tk is None:
        auto_tq, auto_tk = _choose_p3_tiles(C, HW_pad, budget)
    TQ = _pick_tile(HW_pad, tq) if tq is not None else auto_tq
    TK = _pick_tile(HW_pad, tk) if tk is not None else auto_tk
    nS, nQ, nK = HW_pad // TS, HW_pad // TQ, HW_pad // TK
    G = NUM_GROUPS

    member = (jnp.arange(C)[:, None] // (C // G) ==
              jnp.arange(G)[None, :]).astype(jnp.float32)        # (C, G)
    gamma = params["gamma"].reshape(C, 1).astype(jnp.float32)
    beta = params["beta"].reshape(C, 1).astype(jnp.float32)

    def cparams(sem):
        return pltpu.CompilerParams(dimension_semantics=sem,
                                    vmem_limit_bytes=vmem_limit)

    # ---- pass 1: GroupNorm stats -> per-channel scale/shift -----------------
    cvec = pl.BlockSpec((C, 1), lambda b, s: (0, 0))
    scale, shift = pl.pallas_call(
        partial(_gn_stats_kernel, hw=HW),
        out_shape=(jax.ShapeDtypeStruct((B, C, 1), jnp.float32),
                   jax.ShapeDtypeStruct((B, C, 1), jnp.float32)),
        grid_spec=pltpu.PrefetchScalarGridSpec(
            num_scalar_prefetch=0,
            grid=(B, nS),
            in_specs=[pl.BlockSpec((None, C, TS), lambda b, s: (b, 0, s)),
                      pl.BlockSpec((C, G), lambda b, s: (0, 0)),
                      cvec, cvec],
            out_specs=(pl.BlockSpec((None, C, 1), lambda b, s: (b, 0, 0)),
                       pl.BlockSpec((None, C, 1), lambda b, s: (b, 0, 0))),
            scratch_shapes=[pltpu.VMEM((C, 1), jnp.float32),
                            pltpu.VMEM((C, 1), jnp.float32)]),
        compiler_params=cparams(("parallel", "arbitrary")),
    )(x, member, gamma, beta)

    # ---- pass 2: normalize + fused q/k/v projections (bf16 outputs) ---------
    sm_scale = 1.0 / math.sqrt(C)            # folded into wq / bq
    wq = (params["wq"] * sm_scale).astype(jnp.bfloat16)
    wk = params["wk"].astype(jnp.bfloat16)
    wv = params["wv"].astype(jnp.bfloat16)
    wp = params["wp"].astype(jnp.bfloat16)
    bq = (params["bq"] * sm_scale).reshape(C, 1).astype(jnp.float32)
    bk = params["bk"].reshape(C, 1).astype(jnp.float32)
    bv = params["bv"].reshape(C, 1).astype(jnp.float32)
    bp = params["bp"].reshape(C, 1).astype(jnp.float32)
    wqkv = jnp.concatenate([wq, wk, wv], axis=0)           # (3C, C) bf16
    bqkv = jnp.concatenate([bq, bk, bv], axis=0)           # (3C, 1) f32

    tile_in = pl.BlockSpec((None, C, TS), lambda b, s: (b, 0, s))
    bvec_spec = pl.BlockSpec((None, C, 1), lambda b, s: (b, 0, 0))
    wqkv_spec = pl.BlockSpec((3 * C, C), lambda b, s: (0, 0))
    bqkv_spec = pl.BlockSpec((3 * C, 1), lambda b, s: (0, 0))

    q, k, v = pl.pallas_call(
        _qkv_kernel,
        out_shape=tuple(jax.ShapeDtypeStruct((B, C, HW_pad), jnp.bfloat16)
                        for _ in range(3)),
        grid_spec=pltpu.PrefetchScalarGridSpec(
            num_scalar_prefetch=0,
            grid=(B, nS),
            in_specs=[tile_in, bvec_spec, bvec_spec, wqkv_spec, bqkv_spec],
            out_specs=(tile_in, tile_in, tile_in)),
        compiler_params=cparams(("parallel", "parallel")),
    )(x, scale, shift, wqkv, bqkv)

    # ---- pass 3: flash attention + proj_out + residual ----------------------
    mask_keys = HW_pad != HW
    q_spec = pl.BlockSpec((None, C, TQ), lambda b, qi, ki: (b, 0, qi))
    kv_spec = pl.BlockSpec((None, C, TK), lambda b, qi, ki: (b, 0, ki))
    res_spec = pl.BlockSpec((None, C, TQ), lambda b, qi, ki: (b, 0, qi))
    wp_spec = pl.BlockSpec((C, C), lambda b, qi, ki: (0, 0))
    bp_spec = pl.BlockSpec((C, 1), lambda b, qi, ki: (0, 0))

    out = pl.pallas_call(
        partial(_flash_attn_kernel, hw=HW, mask_keys=mask_keys),
        out_shape=jax.ShapeDtypeStruct((B, C, HW_pad), x_nchw.dtype),
        grid_spec=pltpu.PrefetchScalarGridSpec(
            num_scalar_prefetch=0,
            grid=(B, nQ, nK),
            in_specs=[q_spec, kv_spec, kv_spec, res_spec, wp_spec, bp_spec],
            out_specs=res_spec,
            scratch_shapes=[pltpu.VMEM((1, TQ), jnp.float32),
                            pltpu.VMEM((1, TQ), jnp.float32),
                            pltpu.VMEM((C, TQ), jnp.float32)]),
        compiler_params=cparams(("parallel", "parallel", "arbitrary")),
    )(q, k, v, x, wp, bp)

    return out[:, :, :HW].reshape(B, C, H, W)


# --------------------------------------------------------------------------
# Pure-JAX reference mirroring the PyTorch forward pass (f32).
# --------------------------------------------------------------------------
def _reference(x, params):
    B, C, H, W = x.shape
    G = NUM_GROUPS
    xr = x.reshape(B, G, C // G, H, W)
    mean = xr.mean(axis=(2, 3, 4), keepdims=True)
    var = xr.var(axis=(2, 3, 4), keepdims=True)
    hn = ((xr - mean) / jnp.sqrt(var + EPS)).reshape(B, C, H, W)
    hn = hn * params["gamma"].reshape(1, C, 1, 1) + params["beta"].reshape(1, C, 1, 1)

    def conv1x1(t, w, b):
        return jnp.einsum("bchw,oc->bohw", t, w) + b.reshape(1, -1, 1, 1)

    q = conv1x1(hn, params["wq"], params["bq"])
    k = conv1x1(hn, params["wk"], params["bk"])
    v = conv1x1(hn, params["wv"], params["bv"])
    qs = q.reshape(B, C, H * W).transpose(0, 2, 1)
    ks = k.reshape(B, C, H * W).transpose(0, 2, 1)
    vs = v.reshape(B, C, H * W).transpose(0, 2, 1)
    s = jnp.einsum("bqc,bkc->bqk", qs, ks) / jnp.sqrt(jnp.float32(C))
    p = jax.nn.softmax(s, axis=-1)
    a = jnp.einsum("bqk,bkc->bqc", p, vs)
    out = jnp.einsum("bqc,oc->bqo", a, params["wp"]) + params["bp"].reshape(1, 1, -1)
    out = out.transpose(0, 2, 1).reshape(B, C, H, W)
    return x + out


def _init_params(key, C):
    ks = jax.random.split(key, 10)
    bound = 1.0 / jnp.sqrt(jnp.float32(C))
    u = lambda k, shape: jax.random.uniform(k, shape, jnp.float32, -bound, bound)
    return {
        "gamma": 1.0 + 0.1 * jax.random.normal(ks[0], (C,), jnp.float32),
        "beta": 0.1 * jax.random.normal(ks[1], (C,), jnp.float32),
        "wq": u(ks[2], (C, C)), "bq": u(ks[3], (C,)),
        "wk": u(ks[4], (C, C)), "bk": u(ks[5], (C,)),
        "wv": u(ks[6], (C, C)), "bv": u(ks[7], (C,)),
        "wp": u(ks[8], (C, C)), "bp": u(ks[9], (C,)),
    }


if __name__ == "__main__":
    # Case 1: HW = 256 (128-multiple).  Small tile caps (128) force multiple
    # spatial / query / KV tiles so the online-softmax and stats-accumulation
    # paths are exercised at this small shape.
    B, C, H, W = 2, 64, 16, 16
    key = jax.random.PRNGKey(0)
    kx, kp = jax.random.split(key)
    x = jax.random.normal(kx, (B, C, H, W), jnp.float32)
    params = _init_params(kp, C)

    fn = jax.jit(lambda xx, pp: memory_efficient_attn_block(
        xx, pp, tq=128, tk=128, ts=128))
    out = jax.block_until_ready(fn(x, params))
    ref = jax.block_until_ready(_reference(x, params))
    assert out.shape == x.shape and out.dtype == x.dtype
    err1 = float(jnp.max(jnp.abs(out - ref)))
    # bf16 MXU operands (f32 accumulation) -> tolerance relaxed vs pure f32.
    assert jnp.allclose(out, ref, atol=3e-2, rtol=3e-2), f"case1 max err {err1}"

    # Case 2: HW = 144 (not a 128-multiple) -> exercises lane padding + key
    # masking and the automatic (VMEM-budgeted) tile selection.
    B2, C2, H2, W2 = 1, 64, 12, 12
    kx2, kp2 = jax.random.split(jax.random.PRNGKey(1))
    x2 = jax.random.normal(kx2, (B2, C2, H2, W2), jnp.float32)
    params2 = _init_params(kp2, C2)
    fn2 = jax.jit(lambda xx, pp: memory_efficient_attn_block(xx, pp))
    out2 = jax.block_until_ready(fn2(x2, params2))
    ref2 = jax.block_until_ready(_reference(x2, params2))
    assert out2.shape == x2.shape and out2.dtype == x2.dtype
    err2 = float(jnp.max(jnp.abs(out2 - ref2)))
    assert jnp.allclose(out2, ref2, atol=3e-2, rtol=3e-2), f"case2 max err {err2}"

    print("KERNEL_OK")
</pallas_src>

<mosaic_0001>
module attributes {stable_mosaic.version = 11 : i64} {
  func.func @_gn_stats_kernel(%arg0: i32, %arg1: i32, %arg2: memref<1x64x128xf32, #tpu.memory_space<vmem>>, %arg3: memref<64x32xf32, #tpu.memory_space<vmem>>, %arg4: memref<64x1xf32, #tpu.memory_space<vmem>>, %arg5: memref<64x1xf32, #tpu.memory_space<vmem>>, %arg6: memref<1x64x1xf32, #tpu.memory_space<vmem>>, %arg7: memref<1x64x1xf32, #tpu.memory_space<vmem>>, %arg8: memref<64x1xf32, #tpu.memory_space<vmem>>, %arg9: memref<64x1xf32, #tpu.memory_space<vmem>>) attributes {dimension_semantics = [#tpu.dimension_semantics<parallel>, #tpu.dimension_semantics<arbitrary>], iteration_bounds = array<i64: 2, 2>, scalar_prefetch = 0 : i64, scratch_operands = 2 : i64, tpu.core_type = #tpu.core_type<tc>, window_params = [{transform_indices = @transform_0, window_bounds = array<i64: 1, 64, 128>}, {pipeline_mode = #tpu.pipeline_mode<synchronous>, transform_indices = @transform_1, window_bounds = array<i64: 64, 32>}, {pipeline_mode = #tpu.pipeline_mode<synchronous>, transform_indices = @transform_2, window_bounds = array<i64: 64, 1>}, {pipeline_mode = #tpu.pipeline_mode<synchronous>, transform_indices = @transform_3, window_bounds = array<i64: 64, 1>}, {transform_indices = @transform_4, window_bounds = array<i64: 1, 64, 1>}, {transform_indices = @transform_5, window_bounds = array<i64: 1, 64, 1>}]} {
    %c0_i32 = arith.constant 0 : i32
    %0 = arith.cmpi eq, %arg1, %c0_i32 : i32
    %1 = arith.extui %0 : i1 to i32
    %c0_i32_0 = arith.constant 0 : i32
    %2 = arith.cmpi ne, %1, %c0_i32_0 : i32
    scf.if %2 {
      %cst_13 = arith.constant 0.000000e+00 : f32
      %19 = vector.broadcast %cst_13 : f32 to vector<64x1xf32>
      %c0_14 = arith.constant 0 : index
      %c0_15 = arith.constant 0 : index
      %20 = vector.load %arg8[%c0_14, %c0_15] : memref<64x1xf32, #tpu.memory_space<vmem>>, vector<64x1xf32>
      tpu.vector_store %arg8[%c0_14, %c0_15], %19 {strides = array<i32>} : memref<64x1xf32, #tpu.memory_space<vmem>>, vector<64x1xf32>,
      %cst_16 = arith.constant 0.000000e+00 : f32
      %21 = vector.broadcast %cst_16 : f32 to vector<64x1xf32>
      %c0_17 = arith.constant 0 : index
      %c0_18 = arith.constant 0 : index
      %22 = vector.load %arg9[%c0_17, %c0_18] : memref<64x1xf32, #tpu.memory_space<vmem>>, vector<64x1xf32>
      tpu.vector_store %arg9[%c0_17, %c0_18], %21 {strides = array<i32>} : memref<64x1xf32, #tpu.memory_space<vmem>>, vector<64x1xf32>,
    } else {
    }
    %c0 = arith.constant 0 : index
    %c0_1 = arith.constant 0 : index
    %c0_2 = arith.constant 0 : index
    %3 = vector.load %arg2[%c0, %c0_1, %c0_2] : memref<1x64x128xf32, #tpu.memory_space<vmem>>, vector<1x64x128xf32>
    %4 = vector.shape_cast %3 : vector<1x64x128xf32> to vector<64x128xf32>
    %c0_3 = arith.constant 0 : index
    %c0_4 = arith.constant 0 : index
    %5 = vector.load %arg8[%c0_3, %c0_4] : memref<64x1xf32, #tpu.memory_space<vmem>>, vector<64x1xf32>
    %cst = arith.constant dense<0.000000e+00> : vector<64xf32>
    %6 = vector.multi_reduction <add>, %4, %cst [1] : vector<64x128xf32> to vector<64xf32>
    %7 = vector.shape_cast %6 : vector<64xf32> to vector<64x1xf32>
    %8 = arith.addf %5, %7 : vector<64x1xf32>
    %c0_5 = arith.constant 0 : index
    %c0_6 = arith.constant 0 : index
    %9 = vector.load %arg8[%c0_5, %c0_6] : memref<64x1xf32, #tpu.memory_space<vmem>>, vector<64x1xf32>
    tpu.vector_store %arg8[%c0_5, %c0_6], %8 {strides = array<i32>} : memref<64x1xf32, #tpu.memory_space<vmem>>, vector<64x1xf32>,
    %c0_7 = arith.constant 0 : index
    %c0_8 = arith.constant 0 : index
    %10 = vector.load %arg9[%c0_7, %c0_8] : memref<64x1xf32, #tpu.memory_space<vmem>>, vector<64x1xf32>
    %11 = arith.mulf %4, %4 : vector<64x128xf32>
    %cst_9 = arith.constant dense<0.000000e+00> : vector<64xf32>
    %12 = vector.multi_reduction <add>, %11, %cst_9 [1] : vector<64x128xf32> to vector<64xf32>
    %13 = vector.shape_cast %12 : vector<64xf32> to vector<64x1xf32>
    %14 = arith.addf %10, %13 : vector<64x1xf32>
    %c0_10 = arith.constant 0 : index
    %c0_11 = arith.constant 0 : index
    %15 = vector.load %arg9[%c0_10, %c0_11] : memref<64x1xf32, #tpu.memory_space<vmem>>, vector<64x1xf32>
    tpu.vector_store %arg9[%c0_10, %c0_11], %14 {strides = array<i32>} : memref<64x1xf32, #tpu.memory_space<vmem>>, vector<64x1xf32>,
    %c1_i32 = arith.constant 1 : i32
    %16 = arith.cmpi eq, %arg1, %c1_i32 : i32
    %17 = arith.extui %16 : i1 to i32
    %c0_i32_12 = arith.constant 0 : i32
    %18 = arith.cmpi ne, %17, %c0_i32_12 : i32
    scf.if %18 {
      %c0_13 = arith.constant 0 : index
      %c0_14 = arith.constant 0 : index
      %19 = vector.load %arg3[%c0_13, %c0_14] : memref<64x32xf32, #tpu.memory_space<vmem>>, vector<64x32xf32>
      %c0_15 = arith.constant 0 : index
      %c0_16 = arith.constant 0 : index
      %20 = vector.load %arg8[%c0_15, %c0_16] : memref<64x1xf32, #tpu.memory_space<vmem>>, vector<64x1xf32>
      %21 = vector.broadcast %20 : vector<64x1xf32> to vector<64x32xf32>
      %22 = arith.mulf %19, %21 : vector<64x32xf32>
      %cst_17 = arith.constant dense<0.000000e+00> : vector<32xf32>
      %23 = vector.multi_reduction <add>, %22, %cst_17 [0] : vector<64x32xf32> to vector<32xf32>
      %24 = vector.shape_cast %23 : vector<32xf32> to vector<1x32xf32>
      %c0_18 = arith.constant 0 : index
      %c0_19 = arith.constant 0 : index
      %25 = vector.load %arg9[%c0_18, %c0_19] : memref<64x1xf32, #tpu.memory_space<vmem>>, vector<64x1xf32>
      %26 = vector.broadcast %25 : vector<64x1xf32> to vector<64x32xf32>
      %27 = arith.mulf %19, %26 : vector<64x32xf32>
      %cst_20 = arith.constant dense<0.000000e+00> : vector<32xf32>
      %28 = vector.multi_reduction <add>, %27, %cst_20 [0] : vector<64x32xf32> to vector<32xf32>
      %29 = vector.shape_cast %28 : vector<32xf32> to vector<1x32xf32>
      %cst_21 = arith.constant 5.120000e+02 : f32
      %30 = vector.broadcast %cst_21 : f32 to vector<1x32xf32>
      %31 = arith.divf %24, %30 : vector<1x32xf32>
      %cst_22 = arith.constant 5.120000e+02 : f32
      %32 = vector.broadcast %cst_22 : f32 to vector<1x32xf32>
      %33 = arith.divf %29, %32 : vector<1x32xf32>
      %34 = arith.mulf %31, %31 : vector<1x32xf32>
      %35 = arith.subf %33, %34 : vector<1x32xf32>
      %cst_23 = arith.constant 0.000000e+00 : f32
      %36 = vector.broadcast %cst_23 : f32 to vector<1x32xf32>
      %37 = arith.maximumf %35, %36 : vector<1x32xf32>
      %38 = vector.broadcast %31 : vector<1x32xf32> to vector<64x32xf32>
      %39 = arith.mulf %19, %38 : vector<64x32xf32>
      %cst_24 = arith.constant dense<0.000000e+00> : vector<64xf32>
      %40 = vector.multi_reduction <add>, %39, %cst_24 [1] : vector<64x32xf32> to vector<64xf32>
      %41 = vector.shape_cast %40 : vector<64xf32> to vector<64x1xf32>
      %42 = vector.broadcast %37 : vector<1x32xf32> to vector<64x32xf32>
      %43 = arith.mulf %19, %42 : vector<64x32xf32>
      %cst_25 = arith.constant dense<0.000000e+00> : vector<64xf32>
      %44 = vector.multi_reduction <add>, %43, %cst_25 [1] : vector<64x32xf32> to vector<64xf32>
      %45 = vector.shape_cast %44 : vector<64xf32> to vector<64x1xf32>
      %cst_26 = arith.constant 9.99999997E-7 : f32
      %46 = vector.broadcast %cst_26 : f32 to vector<64x1xf32>
      %47 = arith.addf %45, %46 : vector<64x1xf32>
      %48 = math.rsqrt %47 : vector<64x1xf32>
      %c0_27 = arith.constant 0 : index
      %c0_28 = arith.constant 0 : index
      %49 = vector.load %arg4[%c0_27, %c0_28] : memref<64x1xf32, #tpu.memory_space<vmem>>, vector<64x1xf32>
      %50 = arith.mulf %48, %49 : vector<64x1xf32>
      %c0_29 = arith.constant 0 : index
      %c0_30 = arith.constant 0 : index
      %c0_31 = arith.constant 0 : index
      %51 = vector.load %arg6[%c0_29, %c0_30, %c0_31] : memref<1x64x1xf32, #tpu.memory_space<vmem>>, vector<1x64x1xf32>
      %52 = vector.shape_cast %51 : vector<1x64x1xf32> to vector<64x1xf32>
      %53 = vector.shape_cast %50 : vector<64x1xf32> to vector<1x64x1xf32>
      tpu.vector_store %arg6[%c0_29, %c0_30, %c0_31], %53 {strides = array<i32>} : memref<1x64x1xf32, #tpu.memory_space<vmem>>, vector<1x64x1xf32>,
      %c0_32 = arith.constant 0 : index
      %c0_33 = arith.constant 0 : index
      %54 = vector.load %arg5[%c0_32, %c0_33] : memref<64x1xf32, #tpu.memory_space<vmem>>, vector<64x1xf32>
      %55 = arith.mulf %41, %50 : vector<64x1xf32>
      %56 = arith.subf %54, %55 : vector<64x1xf32>
      %c0_34 = arith.constant 0 : index
      %c0_35 = arith.constant 0 : index
      %c0_36 = arith.constant 0 : index
      %57 = vector.load %arg7[%c0_34, %c0_35, %c0_36] : memref<1x64x1xf32, #tpu.memory_space<vmem>>, vector<1x64x1xf32>
      %58 = vector.shape_cast %57 : vector<1x64x1xf32> to vector<64x1xf32>
      %59 = vector.shape_cast %56 : vector<64x1xf32> to vector<1x64x1xf32>
      tpu.vector_store %arg7[%c0_34, %c0_35, %c0_36], %59 {strides = array<i32>} : memref<1x64x1xf32, #tpu.memory_space<vmem>>, vector<1x64x1xf32>,
    } else {
    }
    return
  }
  func.func @transform_0(%arg0: i32, %arg1: i32) -> (i32, i32, i32) {
    %c0_i32 = arith.constant 0 : i32
    %c0_i32_0 = arith.constant 0 : i32
    return %arg0, %c0_i32, %arg1 : i32, i32, i32
  }
  func.func @transform_1(%arg0: i32, %arg1: i32) -> (i32, i32) {
    %c0_i32 = arith.constant 0 : i32
    %c0_i32_0 = arith.constant 0 : i32
    %c0_i32_1 = arith.constant 0 : i32
    return %c0_i32, %c0_i32_0 : i32, i32
  }
  func.func @transform_2(%arg0: i32, %arg1: i32) -> (i32, i32) {
    %c0_i32 = arith.constant 0 : i32
    %c0_i32_0 = arith.constant 0 : i32
    %c0_i32_1 = arith.constant 0 : i32
    return %c0_i32, %c0_i32_0 : i32, i32
  }
  func.func @transform_3(%arg0: i32, %arg1: i32) -> (i32, i32) {
    %c0_i32 = arith.constant 0 : i32
    %c0_i32_0 = arith.constant 0 : i32
    %c0_i32_1 = arith.constant 0 : i32
    return %c0_i32, %c0_i32_0 : i32, i32
  }
  func.func @transform_4(%arg0: i32, %arg1: i32) -> (i32, i32, i32) {
    %c0_i32 = arith.constant 0 : i32
    %c0_i32_0 = arith.constant 0 : i32
    %c0_i32_1 = arith.constant 0 : i32
    return %arg0, %c0_i32, %c0_i32_0 : i32, i32, i32
  }
  func.func @transform_5(%arg0: i32, %arg1: i32) -> (i32, i32, i32) {
    %c0_i32 = arith.constant 0 : i32
    %c0_i32_0 = arith.constant 0 : i32
    %c0_i32_1 = arith.constant 0 : i32
    return %arg0, %c0_i32, %c0_i32_0 : i32, i32, i32
  }
}

module attributes {stable_mosaic.version = 11 : i64} {
  func.func @_qkv_kernel(%arg0: i32, %arg1: i32, %arg2: memref<1x64x128xf32, #tpu.memory_space<vmem>>, %arg3: memref<1x64x1xf32, #tpu.memory_space<vmem>>, %arg4: memref<1x64x1xf32, #tpu.memory_space<vmem>>, %arg5: memref<192x64xbf16, #tpu.memory_space<vmem>>, %arg6: memref<192x1xf32, #tpu.memory_space<vmem>>, %arg7: memref<1x64x128xbf16, #tpu.memory_space<vmem>>, %arg8: memref<1x64x128xbf16, #tpu.memory_space<vmem>>, %arg9: memref<1x64x128xbf16, #tpu.memory_space<vmem>>) attributes {dimension_semantics = [#tpu.dimension_semantics<parallel>, #tpu.dimension_semantics<parallel>], iteration_bounds = array<i64: 2, 2>, scalar_prefetch = 0 : i64, scratch_operands = 0 : i64, tpu.core_type = #tpu.core_type<tc>, window_params = [{transform_indices = @transform_0, window_bounds = array<i64: 1, 64, 128>}, {transform_indices = @transform_1, window_bounds = array<i64: 1, 64, 1>}, {transform_indices = @transform_2, window_bounds = array<i64: 1, 64, 1>}, {pipeline_mode = #tpu.pipeline_mode<synchronous>, transform_indices = @transform_3, window_bounds = array<i64: 192, 64>}, {pipeline_mode = #tpu.pipeline_mode<synchronous>, transform_indices = @transform_4, window_bounds = array<i64: 192, 1>}, {transform_indices = @transform_5, window_bounds = array<i64: 1, 64, 128>}, {transform_indices = @transform_6, window_bounds = array<i64: 1, 64, 128>}, {transform_indices = @transform_7, window_bounds = array<i64: 1, 64, 128>}]} {
    %c0 = arith.constant 0 : index
    %c0_0 = arith.constant 0 : index
    %c0_1 = arith.constant 0 : index
    %0 = vector.load %arg2[%c0, %c0_0, %c0_1] : memref<1x64x128xf32, #tpu.memory_space<vmem>>, vector<1x64x128xf32>
    %1 = vector.shape_cast %0 : vector<1x64x128xf32> to vector<64x128xf32>
    %c0_2 = arith.constant 0 : index
    %c0_3 = arith.constant 0 : index
    %c0_4 = arith.constant 0 : index
    %2 = vector.load %arg3[%c0_2, %c0_3, %c0_4] : memref<1x64x1xf32, #tpu.memory_space<vmem>>, vector<1x64x1xf32>
    %3 = vector.shape_cast %2 : vector<1x64x1xf32> to vector<64x1xf32>
    %4 = vector.broadcast %3 : vector<64x1xf32> to vector<64x128xf32>
    %5 = arith.mulf %1, %4 : vector<64x128xf32>
    %c0_5 = arith.constant 0 : index
    %c0_6 = arith.constant 0 : index
    %c0_7 = arith.constant 0 : index
    %6 = vector.load %arg4[%c0_5, %c0_6, %c0_7] : memref<1x64x1xf32, #tpu.memory_space<vmem>>, vector<1x64x1xf32>
    %7 = vector.shape_cast %6 : vector<1x64x1xf32> to vector<64x1xf32>
    %8 = vector.broadcast %7 : vector<64x1xf32> to vector<64x128xf32>
    %9 = arith.addf %5, %8 : vector<64x128xf32>
    %10 = arith.truncf %9 : vector<64x128xf32> to vector<64x128xbf16>
    %c0_8 = arith.constant 0 : index
    %c0_9 = arith.constant 0 : index
    %11 = vector.load %arg5[%c0_8, %c0_9] : memref<192x64xbf16, #tpu.memory_space<vmem>>, vector<192x64xbf16>
    %cst = arith.constant dense<0.000000e+00> : vector<192x128xf32>
    %12 = tpu.matmul %11, %10, %cst {dimension_numbers = #tpu.dot_dimension_numbers<[1], [0], [0], [1], [0, 0, 1, 1], [], []>} : vector<192x64xbf16>, vector<64x128xbf16>, vector<192x128xf32> -> vector<192x128xf32>
    %c0_10 = arith.constant 0 : index
    %c0_11 = arith.constant 0 : index
    %13 = vector.load %arg6[%c0_10, %c0_11] : memref<192x1xf32, #tpu.memory_space<vmem>>, vector<192x1xf32>
    %14 = vector.broadcast %13 : vector<192x1xf32> to vector<192x128xf32>
    %15 = arith.addf %12, %14 : vector<192x128xf32>
    %16 = vector.extract_strided_slice %15 {offsets = [0, 0], sizes = [64, 128], strides = [1, 1]} : vector<192x128xf32> to vector<64x128xf32>
    %17 = arith.truncf %16 : vector<64x128xf32> to vector<64x128xbf16>
    %c0_12 = arith.constant 0 : index
    %c0_13 = arith.constant 0 : index
    %c0_14 = arith.constant 0 : index
    %18 = vector.load %arg7[%c0_12, %c0_13, %c0_14] : memref<1x64x128xbf16, #tpu.memory_space<vmem>>, vector<1x64x128xbf16>
    %19 = vector.shape_cast %18 : vector<1x64x128xbf16> to vector<64x128xbf16>
    %20 = vector.shape_cast %17 : vector<64x128xbf16> to vector<1x64x128xbf16>
    tpu.vector_store %arg7[%c0_12, %c0_13, %c0_14], %20 {strides = array<i32>} : memref<1x64x128xbf16, #tpu.memory_space<vmem>>, vector<1x64x128xbf16>,
    %21 = vector.extract_strided_slice %15 {offsets = [64, 0], sizes = [64, 128], strides = [1, 1]} : vector<192x128xf32> to vector<64x128xf32>
    %22 = arith.truncf %21 : vector<64x128xf32> to vector<64x128xbf16>
    %c0_15 = arith.constant 0 : index
    %c0_16 = arith.constant 0 : index
    %c0_17 = arith.constant 0 : index
    %23 = vector.load %arg8[%c0_15, %c0_16, %c0_17] : memref<1x64x128xbf16, #tpu.memory_space<vmem>>, vector<1x64x128xbf16>
    %24 = vector.shape_cast %23 : vector<1x64x128xbf16> to vector<64x128xbf16>
    %25 = vector.shape_cast %22 : vector<64x128xbf16> to vector<1x64x128xbf16>
    tpu.vector_store %arg8[%c0_15, %c0_16, %c0_17], %25 {strides = array<i32>} : memref<1x64x128xbf16, #tpu.memory_space<vmem>>, vector<1x64x128xbf16>,
    %26 = vector.extract_strided_slice %15 {offsets = [128, 0], sizes = [64, 128], strides = [1, 1]} : vector<192x128xf32> to vector<64x128xf32>
    %27 = arith.truncf %26 : vector<64x128xf32> to vector<64x128xbf16>
    %c0_18 = arith.constant 0 : index
    %c0_19 = arith.constant 0 : index
    %c0_20 = arith.constant 0 : index
    %28 = vector.load %arg9[%c0_18, %c0_19, %c0_20] : memref<1x64x128xbf16, #tpu.memory_space<vmem>>, vector<1x64x128xbf16>
    %29 = vector.shape_cast %28 : vector<1x64x128xbf16> to vector<64x128xbf16>
    %30 = vector.shape_cast %27 : vector<64x128xbf16> to vector<1x64x128xbf16>
    tpu.vector_store %arg9[%c0_18, %c0_19, %c0_20], %30 {strides = array<i32>} : memref<1x64x128xbf16, #tpu.memory_space<vmem>>, vector<1x64x128xbf16>,
    return
  }
  func.func @transform_0(%arg0: i32, %arg1: i32) -> (i32, i32, i32) {
    %c0_i32 = arith.constant 0 : i32
    %c0_i32_0 = arith.constant 0 : i32
    return %arg0, %c0_i32, %arg1 : i32, i32, i32
  }
  func.func @transform_1(%arg0: i32, %arg1: i32) -> (i32, i32, i32) {
    %c0_i32 = arith.constant 0 : i32
    %c0_i32_0 = arith.constant 0 : i32
    %c0_i32_1 = arith.constant 0 : i32
    return %arg0, %c0_i32, %c0_i32_0 : i32, i32, i32
  }
  func.func @transform_2(%arg0: i32, %arg1: i32) -> (i32, i32, i32) {
    %c0_i32 = arith.constant 0 : i32
    %c0_i32_0 = arith.constant 0 : i32
    %c0_i32_1 = arith.constant 0 : i32
    return %arg0, %c0_i32, %c0_i32_0 : i32, i32, i32
  }
  func.func @transform_3(%arg0: i32, %arg1: i32) -> (i32, i32) {
    %c0_i32 = arith.constant 0 : i32
    %c0_i32_0 = arith.constant 0 : i32
    %c0_i32_1 = arith.constant 0 : i32
    return %c0_i32, %c0_i32_0 : i32, i32
  }
  func.func @transform_4(%arg0: i32, %arg1: i32) -> (i32, i32) {
    %c0_i32 = arith.constant 0 : i32
    %c0_i32_0 = arith.constant 0 : i32
    %c0_i32_1 = arith.constant 0 : i32
    return %c0_i32, %c0_i32_0 : i32, i32
  }
  func.func @transform_5(%arg0: i32, %arg1: i32) -> (i32, i32, i32) {
    %c0_i32 = arith.constant 0 : i32
    %c0_i32_0 = arith.constant 0 : i32
    return %arg0, %c0_i32, %arg1 : i32, i32, i32
  }
  func.func @transform_6(%arg0: i32, %arg1: i32) -> (i32, i32, i32) {
    %c0_i32 = arith.constant 0 : i32
    %c0_i32_0 = arith.constant 0 : i32
    return %arg0, %c0_i32, %arg1 : i32, i32, i32
  }
  func.func @transform_7(%arg0: i32, %arg1: i32) -> (i32, i32, i32) {
    %c0_i32 = arith.constant 0 : i32
    %c0_i32_0 = arith.constant 0 : i32
    return %arg0, %c0_i32, %arg1 : i32, i32, i32
  }
}

module attributes {stable_mosaic.version = 11 : i64} {
  func.func @_flash_attn_kernel(%arg0: i32, %arg1: i32, %arg2: i32, %arg3: memref<1x64x128xbf16, #tpu.memory_space<vmem>>, %arg4: memref<1x64x128xbf16, #tpu.memory_space<vmem>>, %arg5: memref<1x64x128xbf16, #tpu.memory_space<vmem>>, %arg6: memref<1x64x128xf32, #tpu.memory_space<vmem>>, %arg7: memref<64x64xbf16, #tpu.memory_space<vmem>>, %arg8: memref<64x1xf32, #tpu.memory_space<vmem>>, %arg9: memref<1x64x128xf32, #tpu.memory_space<vmem>>, %arg10: memref<1x128xf32, #tpu.memory_space<vmem>>, %arg11: memref<1x128xf32, #tpu.memory_space<vmem>>, %arg12: memref<64x128xf32, #tpu.memory_space<vmem>>) attributes {dimension_semantics = [#tpu.dimension_semantics<parallel>, #tpu.dimension_semantics<parallel>, #tpu.dimension_semantics<arbitrary>], iteration_bounds = array<i64: 2, 2, 2>, scalar_prefetch = 0 : i64, scratch_operands = 3 : i64, tpu.core_type = #tpu.core_type<tc>, window_params = [{transform_indices = @transform_0, window_bounds = array<i64: 1, 64, 128>}, {transform_indices = @transform_1, window_bounds = array<i64: 1, 64, 128>}, {transform_indices = @transform_2, window_bounds = array<i64: 1, 64, 128>}, {transform_indices = @transform_3, window_bounds = array<i64: 1, 64, 128>}, {pipeline_mode = #tpu.pipeline_mode<synchronous>, transform_indices = @transform_4, window_bounds = array<i64: 64, 64>}, {pipeline_mode = #tpu.pipeline_mode<synchronous>, transform_indices = @transform_5, window_bounds = array<i64: 64, 1>}, {transform_indices = @transform_6, window_bounds = array<i64: 1, 64, 128>}]} {
    %c0_i32 = arith.constant 0 : i32
    %0 = arith.cmpi eq, %arg2, %c0_i32 : i32
    %1 = arith.extui %0 : i1 to i32
    %c0_i32_0 = arith.constant 0 : i32
    %2 = arith.cmpi ne, %1, %c0_i32_0 : i32
    scf.if %2 {
      %cst_25 = arith.constant 0xFF800000 : f32
      %36 = vector.broadcast %cst_25 : f32 to vector<1x128xf32>
      %c0_26 = arith.constant 0 : index
      %c0_27 = arith.constant 0 : index
      %37 = vector.load %arg10[%c0_26, %c0_27] : memref<1x128xf32, #tpu.memory_space<vmem>>, vector<1x128xf32>
      tpu.vector_store %arg10[%c0_26, %c0_27], %36 {strides = array<i32>} : memref<1x128xf32, #tpu.memory_space<vmem>>, vector<1x128xf32>,
      %cst_28 = arith.constant 0.000000e+00 : f32
      %38 = vector.broadcast %cst_28 : f32 to vector<1x128xf32>
      %c0_29 = arith.constant 0 : index
      %c0_30 = arith.constant 0 : index
      %39 = vector.load %arg11[%c0_29, %c0_30] : memref<1x128xf32, #tpu.memory_space<vmem>>, vector<1x128xf32>
      tpu.vector_store %arg11[%c0_29, %c0_30], %38 {strides = array<i32>} : memref<1x128xf32, #tpu.memory_space<vmem>>, vector<1x128xf32>,
      %cst_31 = arith.constant 0.000000e+00 : f32
      %40 = vector.broadcast %cst_31 : f32 to vector<64x128xf32>
      %c0_32 = arith.constant 0 : index
      %c0_33 = arith.constant 0 : index
      %41 = vector.load %arg12[%c0_32, %c0_33] : memref<64x128xf32, #tpu.memory_space<vmem>>, vector<64x128xf32>
      tpu.vector_store %arg12[%c0_32, %c0_33], %40 {strides = array<i32>} : memref<64x128xf32, #tpu.memory_space<vmem>>, vector<64x128xf32>,
    } else {
    }
    %c0 = arith.constant 0 : index
    %c0_1 = arith.constant 0 : index
    %c0_2 = arith.constant 0 : index
    %3 = vector.load %arg3[%c0, %c0_1, %c0_2] : memref<1x64x128xbf16, #tpu.memory_space<vmem>>, vector<1x64x128xbf16>
    %4 = vector.shape_cast %3 : vector<1x64x128xbf16> to vector<64x128xbf16>
    %c0_3 = arith.constant 0 : index
    %c0_4 = arith.constant 0 : index
    %c0_5 = arith.constant 0 : index
    %5 = vector.load %arg4[%c0_3, %c0_4, %c0_5] : memref<1x64x128xbf16, #tpu.memory_space<vmem>>, vector<1x64x128xbf16>
    %6 = vector.shape_cast %5 : vector<1x64x128xbf16> to vector<64x128xbf16>
    %c0_6 = arith.constant 0 : index
    %c0_7 = arith.constant 0 : index
    %c0_8 = arith.constant 0 : index
    %7 = vector.load %arg5[%c0_6, %c0_7, %c0_8] : memref<1x64x128xbf16, #tpu.memory_space<vmem>>, vector<1x64x128xbf16>
    %8 = vector.shape_cast %7 : vector<1x64x128xbf16> to vector<64x128xbf16>
    %cst = arith.constant dense<0.000000e+00> : vector<128x128xf32>
    %9 = tpu.matmul %6, %4, %cst {dimension_numbers = #tpu.dot_dimension_numbers<[0], [0], [1], [1], [0, 1, 1, 1], [], []>} : vector<64x128xbf16>, vector<64x128xbf16>, vector<128x128xf32> -> vector<128x128xf32>
    %c0_9 = arith.constant 0 : index
    %c0_10 = arith.constant 0 : index
    %10 = vector.load %arg10[%c0_9, %c0_10] : memref<1x128xf32, #tpu.memory_space<vmem>>, vector<1x128xf32>
    %cst_11 = arith.constant dense<0xFF800000> : vector<128xf32>
    %11 = vector.multi_reduction <maximumf>, %9, %cst_11 [0] : vector<128x128xf32> to vector<128xf32>
    %12 = vector.shape_cast %11 : vector<128xf32> to vector<1x128xf32>
    %13 = arith.maximumf %10, %12 : vector<1x128xf32>
    %14 = arith.subf %10, %13 : vector<1x128xf32>
    %15 = math.exp %14 : vector<1x128xf32>
    %16 = vector.broadcast %13 : vector<1x128xf32> to vector<128x128xf32>
    %17 = arith.subf %9, %16 : vector<128x128xf32>
    %18 = math.exp %17 : vector<128x128xf32>
    %c0_12 = arith.constant 0 : index
    %c0_13 = arith.constant 0 : index
    %19 = vector.load %arg11[%c0_12, %c0_13] : memref<1x128xf32, #tpu.memory_space<vmem>>, vector<1x128xf32>
    %20 = arith.mulf %15, %19 : vector<1x128xf32>
    %cst_14 = arith.constant dense<0.000000e+00> : vector<128xf32>
    %21 = vector.multi_reduction <add>, %18, %cst_14 [0] : vector<128x128xf32> to vector<128xf32>
    %22 = vector.shape_cast %21 : vector<128xf32> to vector<1x128xf32>
    %23 = arith.addf %20, %22 : vector<1x128xf32>
    %c0_15 = arith.constant 0 : index
    %c0_16 = arith.constant 0 : index
    %24 = vector.load %arg11[%c0_15, %c0_16] : memref<1x128xf32, #tpu.memory_space<vmem>>, vector<1x128xf32>
    tpu.vector_store %arg11[%c0_15, %c0_16], %23 {strides = array<i32>} : memref<1x128xf32, #tpu.memory_space<vmem>>, vector<1x128xf32>,
    %c0_17 = arith.constant 0 : index
    %c0_18 = arith.constant 0 : index
    %25 = vector.load %arg12[%c0_17, %c0_18] : memref<64x128xf32, #tpu.memory_space<vmem>>, vector<64x128xf32>
    %26 = vector.broadcast %15 : vector<1x128xf32> to vector<64x128xf32>
    %27 = arith.mulf %26, %25 : vector<64x128xf32>
    %28 = arith.truncf %18 : vector<128x128xf32> to vector<128x128xbf16>
    %cst_19 = arith.constant dense<0.000000e+00> : vector<64x128xf32>
    %29 = tpu.matmul %8, %28, %cst_19 {dimension_numbers = #tpu.dot_dimension_numbers<[1], [0], [0], [1], [0, 0, 1, 1], [], []>} : vector<64x128xbf16>, vector<128x128xbf16>, vector<64x128xf32> -> vector<64x128xf32>
    %30 = arith.addf %27, %29 : vector<64x128xf32>
    %c0_20 = arith.constant 0 : index
    %c0_21 = arith.constant 0 : index
    %31 = vector.load %arg12[%c0_20, %c0_21] : memref<64x128xf32, #tpu.memory_space<vmem>>, vector<64x128xf32>
    tpu.vector_store %arg12[%c0_20, %c0_21], %30 {strides = array<i32>} : memref<64x128xf32, #tpu.memory_space<vmem>>, vector<64x128xf32>,
    %c0_22 = arith.constant 0 : index
    %c0_23 = arith.constant 0 : index
    %32 = vector.load %arg10[%c0_22, %c0_23] : memref<1x128xf32, #tpu.memory_space<vmem>>, vector<1x128xf32>
    tpu.vector_store %arg10[%c0_22, %c0_23], %13 {strides = array<i32>} : memref<1x128xf32, #tpu.memory_space<vmem>>, vector<1x128xf32>,
    %c1_i32 = arith.constant 1 : i32
    %33 = arith.cmpi eq, %arg2, %c1_i32 : i32
    %34 = arith.extui %33 : i1 to i32
    %c0_i32_24 = arith.constant 0 : i32
    %35 = arith.cmpi ne, %34, %c0_i32_24 : i32
    scf.if %35 {
      %c0_25 = arith.constant 0 : index
      %c0_26 = arith.constant 0 : index
      %36 = vector.load %arg11[%c0_25, %c0_26] : memref<1x128xf32, #tpu.memory_space<vmem>>, vector<1x128xf32>
      %37 = tpu.reciprocal %36 {approx = true} : vector<1x128xf32> -> vector<1x128xf32>
      %c0_27 = arith.constant 0 : index
      %c0_28 = arith.constant 0 : index
      %38 = vector.load %arg12[%c0_27, %c0_28] : memref<64x128xf32, #tpu.memory_space<vmem>>, vector<64x128xf32>
      %39 = vector.broadcast %37 : vector<1x128xf32> to vector<64x128xf32>
      %40 = arith.mulf %38, %39 : vector<64x128xf32>
      %41 = arith.truncf %40 : vector<64x128xf32> to vector<64x128xbf16>
      %c0_29 = arith.constant 0 : index
      %c0_30 = arith.constant 0 : index
      %42 = vector.load %arg7[%c0_29, %c0_30] : memref<64x64xbf16, #tpu.memory_space<vmem>>, vector<64x64xbf16>
      %cst_31 = arith.constant dense<0.000000e+00> : vector<64x128xf32>
      %43 = tpu.matmul %42, %41, %cst_31 {dimension_numbers = #tpu.dot_dimension_numbers<[1], [0], [0], [1], [0, 0, 1, 1], [], []>} : vector<64x64xbf16>, vector<64x128xbf16>, vector<64x128xf32> -> vector<64x128xf32>
      %c0_32 = arith.constant 0 : index
      %c0_33 = arith.constant 0 : index
      %44 = vector.load %arg8[%c0_32, %c0_33] : memref<64x1xf32, #tpu.memory_space<vmem>>, vector<64x1xf32>
      %45 = vector.broadcast %44 : vector<64x1xf32> to vector<64x128xf32>
      %46 = arith.addf %43, %45 : vector<64x128xf32>
      %c0_34 = arith.constant 0 : index
      %c0_35 = arith.constant 0 : index
      %c0_36 = arith.constant 0 : index
      %47 = vector.load %arg6[%c0_34, %c0_35, %c0_36] : memref<1x64x128xf32, #tpu.memory_space<vmem>>, vector<1x64x128xf32>
      %48 = vector.shape_cast %47 : vector<1x64x128xf32> to vector<64x128xf32>
      %49 = arith.addf %48, %46 : vector<64x128xf32>
      %c0_37 = arith.constant 0 : index
      %c0_38 = arith.constant 0 : index
      %c0_39 = arith.constant 0 : index
      %50 = vector.load %arg9[%c0_37, %c0_38, %c0_39] : memref<1x64x128xf32, #tpu.memory_space<vmem>>, vector<1x64x128xf32>
      %51 = vector.shape_cast %50 : vector<1x64x128xf32> to vector<64x128xf32>
      %52 = vector.shape_cast %49 : vector<64x128xf32> to vector<1x64x128xf32>
      tpu.vector_store %arg9[%c0_37, %c0_38, %c0_39], %52 {strides = array<i32>} : memref<1x64x128xf32, #tpu.memory_space<vmem>>, vector<1x64x128xf32>,
    } else {
    }
    return
  }
  func.func @transform_0(%arg0: i32, %arg1: i32, %arg2: i32) -> (i32, i32, i32) {
    %c0_i32 = arith.constant 0 : i32
    %c0_i32_0 = arith.constant 0 : i32
    return %arg0, %c0_i32, %arg1 : i32, i32, i32
  }
  func.func @transform_1(%arg0: i32, %arg1: i32, %arg2: i32) -> (i32, i32, i32) {
    %c0_i32 = arith.constant 0 : i32
    %c0_i32_0 = arith.constant 0 : i32
    return %arg0, %c0_i32, %arg2 : i32, i32, i32
  }
  func.func @transform_2(%arg0: i32, %arg1: i32, %arg2: i32) -> (i32, i32, i32) {
    %c0_i32 = arith.constant 0 : i32
    %c0_i32_0 = arith.constant 0 : i32
    return %arg0, %c0_i32, %arg2 : i32, i32, i32
  }
  func.func @transform_3(%arg0: i32, %arg1: i32, %arg2: i32) -> (i32, i32, i32) {
    %c0_i32 = arith.constant 0 : i32
    %c0_i32_0 = arith.constant 0 : i32
    return %arg0, %c0_i32, %arg1 : i32, i32, i32
  }
  func.func @transform_4(%arg0: i32, %arg1: i32, %arg2: i32) -> (i32, i32) {
    %c0_i32 = arith.constant 0 : i32
    %c0_i32_0 = arith.constant 0 : i32
    %c0_i32_1 = arith.constant 0 : i32
    return %c0_i32, %c0_i32_0 : i32, i32
  }
  func.func @transform_5(%arg0: i32, %arg1: i32, %arg2: i32) -> (i32, i32) {
    %c0_i32 = arith.constant 0 : i32
    %c0_i32_0 = arith.constant 0 : i32
    %c0_i32_1 = arith.constant 0 : i32
    return %c0_i32, %c0_i32_0 : i32, i32
  }
  func.func @transform_6(%arg0: i32, %arg1: i32, %arg2: i32) -> (i32, i32, i32) {
    %c0_i32 = arith.constant 0 : i32
    %c0_i32_0 = arith.constant 0 : i32
    return %arg0, %c0_i32, %arg1 : i32, i32, i32
  }
}

</mosaic_0001>

<bundles_post_ra>
// kernel: _lambda_.3
= control target key start
LH: loop header
LB: loop body
LE: loop exit
PB: predicated region body
PF: predicated region fallthrough
CT: control target
= control target key end

     0   :  { %s1033_s18 = smov 0   ;;  %s1035_s19 = smov 0   ;;  %s1357_s0 = inlined_call_operand.vmem [shape: f32[2,64,256], index: 0, kind: input, shape index: {}]   ;;  %s1358_s1 = inlined_call_operand.vmem [shape: f32[64,32], index: 1, kind: input, shape index: {}]   ;;  %s1359_s2 = inlined_call_operand.vmem [shape: f32[64,1], index: 2, kind: input, shape index: {}]   ;;  %s1360_s3 = inlined_call_operand.vmem [shape: f32[64,1], index: 3, kind: input, shape index: {}]   ;;  %s1361_s4 = inlined_call_operand.vmem [shape: f32[2,64,1], index: 4, kind: output, shape index: {0}]   ;;  %s1362_s5 = inlined_call_operand.vmem [shape: f32[2,64,1], index: 5, kind: output, shape index: {1}]  }
   0x1   :  { %s1037_s20 = smov 0   ;;  %s1039_s21 = smov 0  }
   0x2   :  { %s1041_s22 = smov 0   ;;  %s1043_s23 = smov 0  }
   0x3   :  { %s1045_s24 = smov 0  }
   0x4 LB: > { %s25_s25 = sadd.s32 1, %s991_s22  ;;  %s28_s26 = sadd.s32 1, %s995_s23  ;;  %s999_s24 = sphi %s1045_s24, %s16_s24   ;;  %s995_s23 = sphi %s1043_s23, %s1368_s23   ;;  %s991_s22 = sphi %s1041_s22, %s1367_s22   ;;  %s987_s21 = sphi %s1039_s21, %s1366_s21   ;;  %s983_s20 = sphi %s1037_s20, %s1365_s20   ;;  %s979_s19 = sphi %s1035_s19, %s1364_s19   ;;  %s975_s18 = sphi %s1033_s18, %s1363_s18  }
   0x5   : > { %p26_p0 = scmp.ge.s32.totalorder %s25_s25, 2  ;;  %p44_p1 = scmp.ne.s32.totalorder %s979_s19, %s975_s18 }
   0x6   : > { %p45_p2 = scmp.eq.s32.totalorder %s999_s24, 0  ;;  %s37_s30 = sadd.s32 1, %s979_s19 }
   0x7   : > { %s1370_s25 = smov (%p26_p0, %s25_s25), 0  ;;  %s1372_s26 = smov (!%p26_p0, %s28_s26), %s995_s23 }
   0x8   : > { %p46_p3 = por %p45_p2, %p44_p1  ;;  %p30_p4 = scmp.ge.s32.totalorder %s1372_s26, 2 }
   0x9   : > { %s33_s27 = ssub.s32 %s991_s22, %s1370_s25  ;;  %p853_p6 = scmp.ge.s32.totalorder %s999_s24, 4 }
   0xa   : > { %s1374_s26 = smov (%p30_p4, %s1372_s26), 0 }
   0xb   : > { %s32_s28 = ssub.s32 %s995_s23, %s1374_s26  ;;  %194 = sbr.rel (%p853_p6) target bundleno = 28 (0x1c), region = 28 }
   0xc   : > { %s34_s29 = sor.u32 %s33_s27, %s32_s28 }
   0xd   : > { %p35_p5 = scmp.eq.s32.totalorder %s34_s29, 0 }
   0xf   : > { %s1084_s6 = scalar_select %p35_p5, %s979_s19, %s37_s30  }
  0x12   : > { %197 = sbr.rel (!%p46_p3) target bundleno = 28 (0x1c), region = 32  ;;  %s199_s7 = sand.u32 (%p46_p3), 1, %s979_s19  }
  0x13   : > { %s855_s8 = sshll.u32 (%p46_p3), %s995_s23, 4  ;;  %s854_s9 = sshll.u32 (%p46_p3), %s199_s7, 6 }
  0x14   : > { %s203_s10 = sadd.s32 (%p46_p3), %s991_s22, %s855_s8  ;;  %s201_s15 = scalar_lea.vmem (%p46_p3), [#allocation4], %s854_s9 }
  0x15   : > { %s856_s11 = sshll.u32 (%p46_p3), %s203_s10, 3 }
  0x16   : > { %s205_s14 = scalar_lea.vmem (%p46_p3), %s1357_s0, %s856_s11 }
  0x17   : > { %v247_v0 = vld [vmem:[%s205_s14] sm:$0xff] (%p46_p3)  ;;  %v249_v1 = vld [vmem:[%s205_s14 + $0x10] sm:$0xff] (%p46_p3) }
  0x18   : > { %v251_v2 = vld [vmem:[%s205_s14 + $0x20] sm:$0xff] (%p46_p3)  ;;  %248 = vst [vmem:[%s201_s15] sm:$0xff] (%p46_p3), %v247_v0  ;;  %250 = vst [vmem:[%s201_s15 + $0x8] sm:$0xff] (%p46_p3), %v249_v1  ;;  %v253_v3 = vld [vmem:[%s205_s14 + $0x30] sm:$0xff] (%p46_p3) }
  0x19   : > { %252 = vst [vmem:[%s201_s15 + $0x10] sm:$0xff] %v251_v2  ;;  %v255_v4 = vld [vmem:[%s205_s14 + $0x40] sm:$0xff]  ;;  %v257_v5 = vld [vmem:[%s205_s14 + $0x50] sm:$0xff]  ;;  %254 = vst [vmem:[%s201_s15 + $0x18] sm:$0xff] %v253_v3 }
  0x1a   : > { %256 = vst [vmem:[%s201_s15 + $0x20] sm:$0xff] %v255_v4  ;;  %258 = vst [vmem:[%s201_s15 + $0x28] sm:$0xff] %v257_v5  ;;  %v259_v6 = vld [vmem:[%s205_s14 + $0x60] sm:$0xff]  ;;  %v261_v7 = vld [vmem:[%s205_s14 + $0x70] sm:$0xff] }
  0x1b   : > { %260 = vst [vmem:[%s201_s15 + $0x30] sm:$0xff] %v259_v6  ;;  %262 = vst [vmem:[%s201_s15 + $0x38] sm:$0xff] %v261_v7 }
  0x1c PF: > { %p857_p7 = scmp.ge.s32.totalorder %s999_s24, 1  ;;  %p267_p8 = scmp.lt.s32.totalorder %s999_s24, 5 }
  0x1e   : > { %p268_p9 = pnand %p857_p7, %p267_p8 }
  0x1f   : > { %s274_s16 = sand.u32 (!%p268_p9), 1, %s975_s18   ;;  %p306_p10 = scmp.lt.s32.totalorder (!%p268_p9), %s987_s21, 1 }
  0x20   : > { %271 = sbr.rel (%p268_p9) target bundleno = 575 (0x23f), region = 70  ;;  %s858_s17 = sshll.u32 (!%p268_p9), %s274_s16, 6 }
  0x21   : > { %s1108_s10 = scalar_lea.vmem (!%p268_p9), [#allocation4], %s858_s17  ;;  %p863_p11 = scmp.ne.s32.totalorder (!%p268_p9), %s983_s20, 0 }
  0x27   : > { %s1376_s21 = smov (!%p306_p10, %s987_s21), 1  ;;  %319 = sbr.rel (%p863_p11) target bundleno = 49 (0x31), region = 78 }
  0x28   : > { %s867_s27 = sshll.u32 %s1376_s21, 6  ;;  %vm320_vm0 = vcmask (!%p863_p11), 7168   ;;  %v1001_v8 = vmov (!%p863_p11), 0.0  }
  0x29   : > { %s1101_s30 = scalar_lea.vmem %s1361_s4, %s867_s27  ;;  %s1106_s9 = scalar_lea.vmem %s1362_s5, %s867_s27  ;;  %321 = vst.msk [vmem:[#allocation2] sm:$0xff] (!%p863_p11), %vm320_vm0, %v1001_v8  ;;  %322 = vst.msk [vmem:[#allocation2 + $0x8] sm:$0xff] (!%p863_p11), %vm320_vm0, %v1001_v8 }
  0x2a   : > { %323 = vst.msk [vmem:[#allocation2 + $0x10] sm:$0xff] (!%p863_p11), %vm320_vm0, %v1001_v8  ;;  %324 = vst.msk [vmem:[#allocation2 + $0x18] sm:$0xff] (!%p863_p11), %vm320_vm0, %v1001_v8 }
  0x2b   : > { %325 = vst.msk [vmem:[#allocation2 + $0x20] sm:$0xff] (!%p863_p11), %vm320_vm0, %v1001_v8  ;;  %326 = vst.msk [vmem:[#allocation2 + $0x28] sm:$0xff] (!%p863_p11), %vm320_vm0, %v1001_v8 }
  0x2c   : > { %327 = vst.msk [vmem:[#allocation2 + $0x30] sm:$0xff] (!%p863_p11), %vm320_vm0, %v1001_v8  ;;  %328 = vst.msk [vmem:[#allocation2 + $0x38] sm:$0xff] (!%p863_p11), %vm320_vm0, %v1001_v8 }
  0x2d   : > { %329 = vst.msk [vmem:[#allocation3] sm:$0xff] (!%p863_p11), %vm320_vm0, %v1001_v8  ;;  %330 = vst.msk [vmem:[#allocation3 + $0x8] sm:$0xff] (!%p863_p11), %vm320_vm0, %v1001_v8 }
  0x2e   : > { %331 = vst.msk [vmem:[#allocation3 + $0x10] sm:$0xff] %vm320_vm0, %v1001_v8  ;;  %332 = vst.msk [vmem:[#allocation3 + $0x18] sm:$0xff] %vm320_vm0, %v1001_v8 }
  0x2f   : > { %333 = vst.msk [vmem:[#allocation3 + $0x20] sm:$0xff] %vm320_vm0, %v1001_v8  ;;  %334 = vst.msk [vmem:[#allocation3 + $0x28] sm:$0xff] %vm320_vm0, %v1001_v8 }
  0x30   : > { %335 = vst.msk [vmem:[#allocation3 + $0x30] sm:$0xff] %vm320_vm0, %v1001_v8  ;;  %336 = vst.msk [vmem:[#allocation3 + $0x38] sm:$0xff] %vm320_vm0, %v1001_v8 }
  0x31 PF: > { %v339_v9 = vld [vmem:[%s1108_s10 + $0x10] sm:$0xff]  ;;  %v337_v10 = vld [vmem:[%s1108_s10] sm:$0xff]  ;;  %v340_v11 = vld [vmem:[%s1108_s10 + $0x18] sm:$0xff]  ;;  %vm377_vm1 = vcmask 7168   ;;  %p864_p12 = scmp.ne.s32.totalorder %s983_s20, 1 }
  0x32   : > { %357 = vadd.xlane.f32.xlu1 %v339_v9  ;;  %353 = vadd.xlane.f32.xlu0 %v337_v10  ;;  %v338_v12 = vld [vmem:[%s1108_s10 + $0x8] sm:$0xff]  ;;  %v341_v14 = vld [vmem:[%s1108_s10 + $0x20] sm:$0xff]  ;;  %v344_v15 = vld [vmem:[%s1108_s10 + $0x38] sm:$0xff]  ;;  %v394_v18 = vmul.f32 %v337_v10, %v337_v10  ;;  %v397_v19 = vmul.f32 %v340_v11, %v340_v11  ;;  %v396_v20 = vmul.f32 %v339_v9, %v339_v9  ;;  %vm502_vm2 = vcmask (!%p864_p12), 261120  }
  0x33   : > { %v342_v13 = vld [vmem:[%s1108_s10 + $0x28] sm:$0xff]  ;;  %v343_v16 = vld [vmem:[%s1108_s10 + $0x30] sm:$0xff]  ;;  %v395_v17 = vmul.f32 %v338_v12, %v338_v12  ;;  %v398_v22 = vmul.f32 %v341_v14, %v341_v14  ;;  %v401_v23 = vmul.f32 %v344_v15, %v344_v15  ;;  %v345_v26 = vld [vmem:[#allocation2] sm:$0xff] }
  0x34   : > { %v399_v21 = vmul.f32 %v342_v13, %v342_v13  ;;  %v400_v24 = vmul.f32 %v343_v16, %v343_v16  ;;  %v347_v25 = vld [vmem:[#allocation2 + $0x10] sm:$0xff]  ;;  %v348_v31 = vld [vmem:[#allocation2 + $0x18] sm:$0xff]  ;;  %v346_v32 = vld [vmem:[#allocation2 + $0x8] sm:$0xff] }
  0x35   : > { %v350_v37 = vld [vmem:[#allocation2 + $0x28] sm:$0xff]  ;;  %v349_v38 = vld [vmem:[#allocation2 + $0x20] sm:$0xff] }
  0x36   : > { %359 = vadd.xlane.f32.xlu1 %v340_v11  ;;  %355 = vadd.xlane.f32.xlu0 %v338_v12  ;;  %v352_v43 = vld [vmem:[#allocation2 + $0x38] sm:$0xff]  ;;  %v351_v44 = vld [vmem:[#allocation2 + $0x30] sm:$0xff]  ;;  %v391_v61 = vld [vmem:[#allocation3 + $0x28] sm:$0xff]  ;;  %v1002_v11 = vmov (!%p864_p12), 0  }
  0x37   : > { %v387_v49 = vld [vmem:[#allocation3 + $0x8] sm:$0xff]  ;;  %v386_v50 = vld [vmem:[#allocation3] sm:$0xff]  ;;  %v393_v3 = vld [vmem:[#allocation3 + $0x38] sm:$0xff]  ;;  %928 = vset.pattern.permute.xlu1 (!%p864_p12), %v1002_v11  ;;  %927 = vset.pattern.permute.xlu0 (!%p864_p12), %v1002_v11 }
  0x38   : > { %v389_v55 = vld [vmem:[#allocation3 + $0x18] sm:$0xff]  ;;  %v388_v56 = vld [vmem:[#allocation3 + $0x10] sm:$0xff]  ;;  %v390_v62 = vld [vmem:[#allocation3 + $0x20] sm:$0xff] }
  0x39   : > { %v392_v4 = vld [vmem:[#allocation3 + $0x30] sm:$0xff] }
  0x3a   : > { %363 = vadd.xlane.f32.xlu1 %v342_v13  ;;  %361 = vadd.xlane.f32.xlu0 %v341_v14 }
  0x3e   : > { %367 = vadd.xlane.f32.xlu1 %v344_v15  ;;  %365 = vadd.xlane.f32.xlu0 %v343_v16 }
  0x42   : > { %404 = vadd.xlane.f32.xlu1 %v395_v17  ;;  %402 = vadd.xlane.f32.xlu0 %v394_v18 }
  0x46   : > { %408 = vadd.xlane.f32.xlu1 %v397_v19  ;;  %406 = vadd.xlane.f32.xlu0 %v396_v20 }
  0x4a   : > { %412 = vadd.xlane.f32.xlu1 %v399_v21  ;;  %410 = vadd.xlane.f32.xlu0 %v398_v22 }
  0x4e   : > { %416 = vadd.xlane.f32.xlu1 %v401_v23  ;;  %414 = vadd.xlane.f32.xlu0 %v400_v24 }
  0xbf   : > { %v358_v27 = vpop.xlane.xlu1 %357  ;;  %v354_v28 = vpop.xlane.xlu0 %353 }
  0xc0   : > { %v371_v29 = vadd.f32 %v358_v27, %v347_v25  ;;  %v369_v30 = vadd.f32 %v354_v28, %v345_v26  ;;  %v1155_v28 = vld [vmem:[%s1358_s1 + $0x8] sm:$0xff] (!%p864_p12) }
  0xc2   : > { %380 = vst.msk [vmem:[#allocation2 + $0x10] sm:$0xff] %vm377_vm1, %v371_v29  ;;  %378 = vst.msk [vmem:[#allocation2] sm:$0xff] %vm377_vm1, %v369_v30  ;;  %v1160_v29 = vld [vmem:[%s1358_s1] sm:$0xff] (!%p864_p12) }
  0xc3   : > { %v360_v33 = vpop.xlane.xlu1 %359  ;;  %v356_v34 = vpop.xlane.xlu0 %355 }
  0xc4   : > { %v372_v35 = vadd.f32 %v360_v33, %v348_v31  ;;  %v370_v36 = vadd.f32 %v356_v34, %v346_v32  ;;  %v1167_v34 = vld [vmem:[%s1358_s1 + $0x10] sm:$0xff] (!%p864_p12) }
  0xc6   : > { %381 = vst.msk [vmem:[#allocation2 + $0x18] sm:$0xff] %vm377_vm1, %v372_v35  ;;  %379 = vst.msk [vmem:[#allocation2 + $0x8] sm:$0xff] %vm377_vm1, %v370_v36 }
  0xc7   : > { %v364_v39 = vpop.xlane.xlu1 %363  ;;  %v362_v40 = vpop.xlane.xlu0 %361 }
  0xc8   : > { %v374_v41 = vadd.f32 %v364_v39, %v350_v37  ;;  %v373_v42 = vadd.f32 %v362_v40, %v349_v38  ;;  %v1173_v38 = vld [vmem:[%s1358_s1 + $0x18] sm:$0xff] (!%p864_p12) }
  0xc9   : > { %v448_v9 = vld [vmem:[#allocation2 + $0x10] sm:$0xff] (!%p864_p12)  ;;  %v446_v10 = vld [vmem:[#allocation2] sm:$0xff] (!%p864_p12) }
  0xca   : > { %383 = vst.msk [vmem:[#allocation2 + $0x28] sm:$0xff] %vm377_vm1, %v374_v41  ;;  %382 = vst.msk [vmem:[#allocation2 + $0x20] sm:$0xff] %vm377_vm1, %v373_v42  ;;  %466 = vperm.xlu1 (!%p864_p12), %928, %v448_v9   ;;  %456 = vperm.xlu0 (!%p864_p12), %927, %v446_v10  }
  0xcb   : > { %v368_v45 = vpop.xlane.xlu1 %367  ;;  %v366_v46 = vpop.xlane.xlu0 %365 }
  0xcc   : > { %v376_v47 = vadd.f32 %v368_v45, %v352_v43  ;;  %v375_v48 = vadd.f32 %v366_v46, %v351_v44  ;;  %v1180_v43 = vld [vmem:[%s1358_s1 + $0x20] sm:$0xff] (!%p864_p12)  ;;  %v1186_v46 = vld [vmem:[%s1358_s1 + $0x28] sm:$0xff] (!%p864_p12) }
  0xcd   : > { %v447_v13 = vld [vmem:[#allocation2 + $0x8] sm:$0xff] (!%p864_p12)  ;;  %v449_v14 = vld [vmem:[#allocation2 + $0x18] sm:$0xff] (!%p864_p12) }
  0xce   : > { %385 = vst.msk [vmem:[#allocation2 + $0x38] sm:$0xff] %vm377_vm1, %v376_v47  ;;  %384 = vst.msk [vmem:[#allocation2 + $0x30] sm:$0xff] %vm377_vm1, %v375_v48  ;;  %461 = vperm.xlu0 (!%p864_p12), %927, %v447_v13  }
  0xcf   : > { %v405_v51 = vpop.xlane.xlu1 %404  ;;  %v403_v52 = vpop.xlane.xlu0 %402 }
  0xd0   : > { %v419_v53 = vadd.f32 %v405_v51, %v387_v49  ;;  %v418_v54 = vadd.f32 %v403_v52, %v386_v50 }
  0xd1   : > { %v450_v16 = vld [vmem:[#allocation2 + $0x20] sm:$0xff] (!%p864_p12)  ;;  %v451_v18 = vld [vmem:[#allocation2 + $0x28] sm:$0xff] (!%p864_p12) }
  0xd2   : > { %427 = vst.msk [vmem:[#allocation3 + $0x8] sm:$0xff] %vm377_vm1, %v419_v53  ;;  %426 = vst.msk [vmem:[#allocation3] sm:$0xff] %vm377_vm1, %v418_v54 }
  0xd3   : > { %v409_v57 = vpop.xlane.xlu1 %408  ;;  %v407_v58 = vpop.xlane.xlu0 %406 }
  0xd4   : > { %v421_v59 = vadd.f32 %v409_v57, %v389_v55  ;;  %v420_v60 = vadd.f32 %v407_v58, %v388_v56  ;;  %v1198_v57 = vld [vmem:[%s1358_s1 + $0x30] sm:$0xff] (!%p864_p12) }
  0xd5   : > { %v452_v20 = vld [vmem:[#allocation2 + $0x30] sm:$0xff] (!%p864_p12)  ;;  %v453_v22 = vld [vmem:[#allocation2 + $0x38] sm:$0xff] (!%p864_p12) }
  0xd6   : > { %429 = vst.msk [vmem:[#allocation3 + $0x18] sm:$0xff] %vm377_vm1, %v421_v59  ;;  %428 = vst.msk [vmem:[#allocation3 + $0x10] sm:$0xff] %vm377_vm1, %v420_v60 }
  0xd7   : > { %v413_v63 = vpop.xlane.xlu1 %412  ;;  %v411_v0 = vpop.xlane.xlu0 %410 }
  0xd8   : > { %v423_v1 = vadd.f32 %v413_v63, %v391_v61  ;;  %v422_v2 = vadd.f32 %v411_v0, %v390_v62  ;;  %437 = sbr.rel (%p864_p12) target bundleno = 575 (0x23f), region = 82 }
  0xd9   : > { %v524_v12 = vld [vmem:[#allocation3] sm:$0xff] (!%p864_p12)  ;;  %v525_v15 = vld [vmem:[#allocation3 + $0x8] sm:$0xff] (!%p864_p12) }
  0xda   : > { %431 = vst.msk [vmem:[#allocation3 + $0x28] sm:$0xff] %vm377_vm1, %v423_v1  ;;  %430 = vst.msk [vmem:[#allocation3 + $0x20] sm:$0xff] %vm377_vm1, %v422_v2  ;;  %534 = vperm.xlu1 (!%p864_p12), %928, %v524_v12   ;;  %539 = vperm.xlu0 (!%p864_p12), %927, %v525_v15  }
  0xdb   : > { %v417_v5 = vpop.xlane.xlu1 %416  ;;  %v415_v6 = vpop.xlane.xlu0 %414 }
  0xdc   : > { %v425_v7 = vadd.f32 %v417_v5, %v393_v3  ;;  %v424_v8 = vadd.f32 %v415_v6, %v392_v4 }
  0xdd   : > { %v526_v17 = vld [vmem:[#allocation3 + $0x10] sm:$0xff] (!%p864_p12)  ;;  %v527_v19 = vld [vmem:[#allocation3 + $0x18] sm:$0xff] (!%p864_p12) }
  0xde   : > { %433 = vst.msk [vmem:[#allocation3 + $0x38] sm:$0xff] %vm377_vm1, %v425_v7  ;;  %432 = vst.msk [vmem:[#allocation3 + $0x30] sm:$0xff] %vm377_vm1, %v424_v8  ;;  %471 = vperm.xlu1 (!%p864_p12), %928, %v449_v14   ;;  %544 = vperm.xlu0 (!%p864_p12), %927, %v526_v17   ;;  %v1211_v7 = vld [vmem:[%s1358_s1 + $0x38] sm:$0xff] (!%p864_p12) }
  0xe1   : > { %v528_v21 = vld [vmem:[#allocation3 + $0x20] sm:$0xff]  ;;  %v529_v23 = vld [vmem:[#allocation3 + $0x28] sm:$0xff] }
  0xe2   : > { %476 = vperm.xlu1 %928, %v450_v16   ;;  %549 = vperm.xlu0 %927, %v527_v19  }
  0xe5   : > { %v531_v24 = vld [vmem:[#allocation3 + $0x38] sm:$0xff]  ;;  %v530_v25 = vld [vmem:[#allocation3 + $0x30] sm:$0xff] }
  0xe6   : > { %481 = vperm.xlu1 %928, %v451_v18   ;;  %554 = vperm.xlu0 %927, %v528_v21  }
  0xea   : > { %486 = vperm.xlu1 %928, %v452_v20   ;;  %559 = vperm.xlu0 %927, %v529_v23  }
  0xee   : > { %491 = vperm.xlu1 %928, %v453_v22   ;;  %564 = vperm.xlu0 %927, %v530_v25  }
  0xf2   : > { %569 = vperm.xlu1 %928, %v531_v24  }
 0x149   : > { %v467_v26 = vpop.permute.xlu1 %466  ;;  %v457_v27 = vpop.permute.xlu0 %456 }
 0x14a   : > { %v494_v33 = vmul.f32 %v457_v27, %v1160_v29  ;;  %v496_v39 = vmul.f32 %v467_v26, %v1167_v34 }
 0x14c   : > { %v503_v40 = vsel %vm502_vm2, %v494_v33, 0.0  ;;  %v506_v47 = vsel %vm502_vm2, %v496_v39, 0.0 }
 0x14d   : > { %v462_v31 = vpop.permute.xlu0 %461 }
 0x14e   : > { %v495_v32 = vmul.f32 %v462_v31, %v1155_v28 }
 0x150   : > { %v504_v37 = vsel %vm502_vm2, %v495_v32, 0.0 }
 0x151   : > { %v505_v41 = vadd.f32 %v504_v37, %v503_v40 }
 0x153   : > { %v507_v51 = vadd.f32 %v506_v47, %v505_v41 }
 0x159   : > { %v535_v30 = vpop.permute.xlu1 %534  ;;  %v540_v36 = vpop.permute.xlu0 %539 }
 0x15a   : > { %v573_v48 = vmul.f32 %v540_v36, %v1155_v28  ;;  %v572_v50 = vmul.f32 %v535_v30, %v1160_v29 }
 0x15c   : > { %v581_v58 = vsel %vm502_vm2, %v573_v48, 0.0  ;;  %v580_v61 = vsel %vm502_vm2, %v572_v50, 0.0 }
 0x15d   : > { %v472_v35 = vpop.permute.xlu1 %471  ;;  %v545_v44 = vpop.permute.xlu0 %544  ;;  %v582_v5 = vadd.f32 %v581_v58, %v580_v61 }
 0x15e   : > { %v497_v45 = vmul.f32 %v472_v35, %v1173_v38  ;;  %v574_v55 = vmul.f32 %v545_v44, %v1167_v34 }
 0x160   : > { %v508_v54 = vsel %vm502_vm2, %v497_v45, 0.0  ;;  %v583_v1 = vsel %vm502_vm2, %v574_v55, 0.0 }
 0x161   : > { %v477_v42 = vpop.permute.xlu1 %476  ;;  %v550_v53 = vpop.permute.xlu0 %549  ;;  %v509_v62 = vadd.f32 %v508_v54, %v507_v51  ;;  %v584_v10 = vadd.f32 %v583_v1, %v582_v5 }
 0x162   : > { %v498_v49 = vmul.f32 %v477_v42, %v1180_v43  ;;  %v575_v60 = vmul.f32 %v550_v53, %v1173_v38 }
 0x164   : > { %v510_v59 = vsel %vm502_vm2, %v498_v49, 0.0  ;;  %v585_v8 = vsel %vm502_vm2, %v575_v60, 0.0 }
 0x165   : > { %v482_v52 = vpop.permute.xlu1 %481  ;;  %v555_v0 = vpop.permute.xlu0 %554  ;;  %v511_v6 = vadd.f32 %v510_v59, %v509_v62  ;;  %v586_v17 = vadd.f32 %v585_v8, %v584_v10 }
 0x166   : > { %v499_v56 = vmul.f32 %v482_v52, %v1186_v46  ;;  %v576_v4 = vmul.f32 %v555_v0, %v1180_v43 }
 0x168   : > { %v512_v2 = vsel %vm502_vm2, %v499_v56, 0.0  ;;  %v587_v14 = vsel %vm502_vm2, %v576_v4, 0.0 }
 0x169   : > { %v487_v63 = vpop.permute.xlu1 %486  ;;  %v513_v11 = vadd.f32 %v512_v2, %v511_v6  ;;  %v560_v13 = vpop.permute.xlu0 %559  ;;  %v588_v21 = vadd.f32 %v587_v14, %v586_v17 }
 0x16a   : > { %v500_v3 = vmul.f32 %v487_v63, %v1198_v57  ;;  %v577_v16 = vmul.f32 %v560_v13, %v1186_v46 }
 0x16c   : > { %v514_v9 = vsel %vm502_vm2, %v500_v3, 0.0  ;;  %v589_v20 = vsel %vm502_vm2, %v577_v16, 0.0 }
 0x16d   : > { %v492_v12 = vpop.permute.xlu1 %491  ;;  %v515_v18 = vadd.f32 %v514_v9, %v513_v11  ;;  %v565_v24 = vpop.permute.xlu0 %564  ;;  %v590_v30 = vadd.f32 %v589_v20, %v588_v21 }
 0x16e   : > { %v501_v15 = vmul.f32 %v492_v12, %v1211_v7  ;;  %v578_v26 = vmul.f32 %v565_v24, %v1198_v57 }
 0x170   : > { %v516_v19 = vsel %vm502_vm2, %v501_v15, 0.0  ;;  %v591_v31 = vsel %vm502_vm2, %v578_v26, 0.0 }
 0x171   : > { %v517_v22 = vadd.f32 %v516_v19, %v515_v18  ;;  %v570_v23 = vpop.permute.xlu1 %569  ;;  %v592_v33 = vadd.f32 %v591_v31, %v590_v30  ;;  %v688_v31 = vld [vmem:[%s1359_s2 + $0x8] sm:$0xff] }
 0x172   : > { %v579_v25 = vmul.f32 %v570_v23, %v1211_v7 }
 0x173   : > { %v518_v27 = vrot.slane %v517_v22, 4 }
 0x174   : > { %v593_v35 = vsel %vm502_vm2, %v579_v25, 0.0 }
 0x175   : > { %v519_v32 = vadd.f32 %v518_v27, %v517_v22  ;;  %v594_v37 = vadd.f32 %v593_v35, %v592_v33 }
 0x177   : > { %v520_v36 = vrot.slane %v519_v32, 2  ;;  %v595_v40 = vrot.slane %v594_v37, 4 }
 0x179   : > { %v521_v39 = vadd.f32 %v520_v36, %v519_v32  ;;  %v596_v42 = vadd.f32 %v595_v40, %v594_v37  ;;  %v687_v32 = vld [vmem:[%s1359_s2] sm:$0xff] }
 0x17b   : > { %v522_v41 = vrot.slane %v521_v39, 1  ;;  %v597_v45 = vrot.slane %v596_v42, 2 }
 0x17d   : > { %v523_v44 = vadd.f32 %v522_v41, %v521_v39  ;;  %v598_v47 = vadd.f32 %v597_v45, %v596_v42  ;;  %v691_v42 = vld [vmem:[%s1359_s2 + $0x20] sm:$0xff]  ;;  %v689_v45 = vld [vmem:[%s1359_s2 + $0x10] sm:$0xff] }
 0x17f   : > { %v602_v48 = vmul.f32 0.001953125, %v523_v44  ;;  %v599_v49 = vrot.slane %v598_v47, 1  ;;  %v711_v44 = vld [vmem:[%s1360_s3] sm:$0xff] }
 0x181   : > { %v600_v50 = vadd.f32 %v599_v49, %v598_v47  ;;  %v604_v52 = vmul.f32 %v602_v48, %v602_v48  ;;  %v607_v4 = vmul.f32 %v602_v48, %v1160_v29  ;;  %v609_v9 = vmul.f32 %v602_v48, %v1167_v34 }
 0x182   : > { %v608_v13 = vmul.f32 %v602_v48, %v1155_v28  ;;  %v610_v16 = vmul.f32 %v602_v48, %v1173_v38  ;;  %v614_v19 = vmul.f32 %v602_v48, %v1211_v7 }
 0x183   : > { %v603_v51 = vmul.f32 0.001953125, %v600_v50  ;;  %v615_v6 = vsel %vm502_vm2, %v607_v4, 0.0  ;;  %v621_v11 = vsel %vm502_vm2, %v609_v9, 0.0 }
 0x184   : > { %v618_v15 = vsel %vm502_vm2, %v608_v13, 0.0  ;;  %v624_v18 = vsel %vm502_vm2, %v610_v16, 0.0  ;;  %v636_v20 = vsel %vm502_vm2, %v614_v19, 0.0  ;;  %v714_v13 = vld [vmem:[%s1360_s3 + $0x18] sm:$0xff]  ;;  %v716_v19 = vld [vmem:[%s1360_s3 + $0x28] sm:$0xff] }
 0x185   : > { %v605_v53 = vsub.f32 %v603_v51, %v604_v52 }
 0x187   : > { %v606_v54 = vmax.f32 %v605_v53, 0.0 }
 0x189   : > { %v640_v55 = vmul.f32 %v606_v54, %v1155_v28  ;;  %v639_v56 = vmul.f32 %v606_v54, %v1160_v29  ;;  %v643_v60 = vmul.f32 %v606_v54, %v1180_v43  ;;  %v641_v61 = vmul.f32 %v606_v54, %v1167_v34 }
 0x18a   : > { %v645_v0 = vmul.f32 %v606_v54, %v1198_v57  ;;  %v642_v1 = vmul.f32 %v606_v54, %v1173_v38  ;;  %v644_v5 = vmul.f32 %v606_v54, %v1186_v46  ;;  %v646_v10 = vmul.f32 %v606_v54, %v1211_v7 }
 0x18b   : > { %v650_v58 = vsel %vm502_vm2, %v640_v55, 0.0  ;;  %v647_v59 = vsel %vm502_vm2, %v639_v56, 0.0  ;;  %v659_v62 = vsel %vm502_vm2, %v643_v60, 0.0  ;;  %v653_v63 = vsel %vm502_vm2, %v641_v61, 0.0  ;;  %v713_v55 = vld [vmem:[%s1360_s3 + $0x10] sm:$0xff]  ;;  %v712_v61 = vld [vmem:[%s1360_s3 + $0x8] sm:$0xff] }
 0x18c   : > { %651 = vadd.xlane.f32.xlu1 %v650_v58  ;;  %648 = vadd.xlane.f32.xlu0 %v647_v59  ;;  %v665_v2 = vsel %vm502_vm2, %v645_v0, 0.0  ;;  %v656_v3 = vsel %vm502_vm2, %v642_v1, 0.0  ;;  %v662_v8 = vsel %vm502_vm2, %v644_v5, 0.0  ;;  %v668_v12 = vsel %vm502_vm2, %v646_v10, 0.0  ;;  %v693_v58 = vld [vmem:[%s1359_s2 + $0x30] sm:$0xff]  ;;  %v715_v59 = vld [vmem:[%s1360_s3 + $0x20] sm:$0xff] }
 0x18d   : > { %v611_v29 = vmul.f32 %v602_v48, %v1180_v43  ;;  %v613_v34 = vmul.f32 %v602_v48, %v1198_v57  ;;  %v612_v43 = vmul.f32 %v602_v48, %v1186_v46 }
 0x18f   : > { %v627_v14 = vsel %vm502_vm2, %v611_v29, 0.0  ;;  %v633_v17 = vsel %vm502_vm2, %v613_v34, 0.0  ;;  %v630_v28 = vsel %vm502_vm2, %v612_v43, 0.0 }
 0x190   : > { %660 = vadd.xlane.f32.xlu1 %v659_v62  ;;  %654 = vadd.xlane.f32.xlu0 %v653_v63  ;;  %v690_v63 = vld [vmem:[%s1359_s2 + $0x18] sm:$0xff] }
 0x194   : > { %666 = vadd.xlane.f32.xlu1 %v665_v2  ;;  %657 = vadd.xlane.f32.xlu0 %v656_v3 }
 0x198   : > { %616 = vadd.xlane.f32.xlu1 %v615_v6  ;;  %663 = vadd.xlane.f32.xlu0 %v662_v8 }
 0x19c   : > { %622 = vadd.xlane.f32.xlu1 %v621_v11  ;;  %669 = vadd.xlane.f32.xlu0 %v668_v12  ;;  %v692_v11 = vld [vmem:[%s1359_s2 + $0x28] sm:$0xff]  ;;  %v717_v12 = vld [vmem:[%s1360_s3 + $0x30] sm:$0xff] }
 0x1a0   : > { %628 = vadd.xlane.f32.xlu1 %v627_v14  ;;  %619 = vadd.xlane.f32.xlu0 %v618_v15 }
 0x1a4   : > { %634 = vadd.xlane.f32.xlu1 %v633_v17  ;;  %625 = vadd.xlane.f32.xlu0 %v624_v18 }
 0x1a8   : > { %631 = vadd.xlane.f32.xlu0 %v630_v28  ;;  %v694_v28 = vld [vmem:[%s1359_s2 + $0x38] sm:$0xff] }
 0x1ac   : > { %637 = vadd.xlane.f32.xlu0 %v636_v20 }
 0x219   : > { %v652_v57 = vpop.xlane.xlu1 %651  ;;  %v649_v38 = vpop.xlane.xlu0 %648 }
 0x21a   : > { %v672_v21 = vadd.f32 1e-06, %v652_v57  ;;  %v671_v22 = vadd.f32 1e-06, %v649_v38 }
 0x21c   : > { %929 = vrsqrt.f32 %v672_v21 }
 0x21d   : > { %931 = vrsqrt.f32 %v671_v22  ;;  %v661_v23 = vpop.xlane.xlu1 %660  ;;  %v655_v24 = vpop.xlane.xlu0 %654 }
 0x21e   : > { %v675_v25 = vadd.f32 1e-06, %v661_v23  ;;  %v673_v46 = vadd.f32 1e-06, %v655_v24  ;;  %v718_v23 = vld [vmem:[%s1360_s3 + $0x38] sm:$0xff] }
 0x220   : > { %933 = vrsqrt.f32 %v675_v25 }
 0x221   : > { %935 = vrsqrt.f32 %v673_v46  ;;  %v667_v26 = vpop.xlane.xlu1 %666  ;;  %v658_v27 = vpop.xlane.xlu0 %657 }
 0x222   : > { %v677_v30 = vadd.f32 1e-06, %v667_v26  ;;  %v674_v7 = vadd.f32 1e-06, %v658_v27 }
 0x224   : > { %937 = vrsqrt.f32 %v677_v30 }
 0x225   : > { %939 = vrsqrt.f32 %v674_v7  ;;  %v617_v33 = vpop.xlane.xlu1 %616  ;;  %v664_v35 = vpop.xlane.xlu0 %663 }
 0x226   : > { %v930_v36 = vpop.eup %929  ;;  %v676_v37 = vadd.f32 1e-06, %v664_v35 }
 0x227   : > { %v932_v39 = vpop.eup %931  ;;  %v696_v40 = vmul.f32 %v930_v36, %v688_v31 }
 0x228   : > { %v695_v41 = vmul.f32 %v932_v39, %v687_v32  ;;  %941 = vrsqrt.f32 %v676_v37 }
 0x229   : > { %v623_v47 = vpop.xlane.xlu1 %622  ;;  %v670_v48 = vpop.xlane.xlu0 %669  ;;  %704 = vst.msk [vmem:[%s1101_s30 + $0x8] sm:$0xff] %vm377_vm1, %v696_v40 }
 0x22a   : > { %v934_v49 = vpop.eup %933  ;;  %703 = vst.msk [vmem:[%s1101_s30] sm:$0xff] %vm377_vm1, %v695_v41  ;;  %v719_v50 = vmul.f32 %v695_v41, %v617_v33  ;;  %v678_v51 = vadd.f32 1e-06, %v670_v48 }
 0x22b   : > { %v936_v52 = vpop.eup %935  ;;  %v699_v53 = vmul.f32 %v934_v49, %v691_v42 }
 0x22c   : > { %v727_v54 = vsub.f32 %v711_v44, %v719_v50  ;;  %v697_v56 = vmul.f32 %v936_v52, %v689_v45  ;;  %943 = vrsqrt.f32 %v678_v51 }
 0x22d   : > { %707 = vst.msk [vmem:[%s1101_s30 + $0x20] sm:$0xff] %vm377_vm1, %v699_v53  ;;  %v629_v60 = vpop.xlane.xlu1 %628  ;;  %v620_v62 = vpop.xlane.xlu0 %619 }
 0x22e   : > { %v938_v0 = vpop.eup %937  ;;  %735 = vst.msk [vmem:[%s1106_s9] sm:$0xff] %vm377_vm1, %v727_v54  ;;  %705 = vst.msk [vmem:[%s1101_s30 + $0x10] sm:$0xff] %vm377_vm1, %v697_v56  ;;  %v721_v1 = vmul.f32 %v697_v56, %v623_v47  ;;  %v723_v2 = vmul.f32 %v699_v53, %v629_v60  ;;  %v720_v3 = vmul.f32 %v696_v40, %v620_v62 }
 0x22f   : > { %v940_v4 = vpop.eup %939  ;;  %v701_v5 = vmul.f32 %v938_v0, %v693_v58 }
 0x230   : > { %v729_v6 = vsub.f32 %v713_v55, %v721_v1  ;;  %v731_v8 = vsub.f32 %v715_v59, %v723_v2  ;;  %v728_v9 = vsub.f32 %v712_v61, %v720_v3  ;;  %v698_v10 = vmul.f32 %v940_v4, %v690_v63 }
 0x231   : > { %709 = vst.msk [vmem:[%s1101_s30 + $0x30] sm:$0xff] %vm377_vm1, %v701_v5  ;;  %v635_v29 = vpop.xlane.xlu1 %634  ;;  %v626_v14 = vpop.xlane.xlu0 %625 }
 0x232   : > { %v942_v15 = vpop.eup %941  ;;  %737 = vst.msk [vmem:[%s1106_s9 + $0x10] sm:$0xff] %vm377_vm1, %v729_v6  ;;  %739 = vst.msk [vmem:[%s1106_s9 + $0x20] sm:$0xff] %vm377_vm1, %v731_v8  ;;  %v725_v34 = vmul.f32 %v701_v5, %v635_v29  ;;  %v722_v16 = vmul.f32 %v698_v10, %v626_v14 }
 0x233   : > { %736 = vst.msk [vmem:[%s1106_s9 + $0x8] sm:$0xff] %vm377_vm1, %v728_v9  ;;  %706 = vst.msk [vmem:[%s1101_s30 + $0x18] sm:$0xff] %vm377_vm1, %v698_v10  ;;  %v700_v17 = vmul.f32 %v942_v15, %v692_v11 }
 0x234   : > { %v733_v18 = vsub.f32 %v717_v12, %v725_v34  ;;  %v730_v43 = vsub.f32 %v714_v13, %v722_v16 }
 0x235   : > { %708 = vst.msk [vmem:[%s1101_s30 + $0x28] sm:$0xff] %vm377_vm1, %v700_v17  ;;  %v632_v20 = vpop.xlane.xlu0 %631 }
 0x236   : > { %v944_v57 = vpop.eup %943  ;;  %741 = vst.msk [vmem:[%s1106_s9 + $0x30] sm:$0xff] %vm377_vm1, %v733_v18  ;;  %738 = vst.msk [vmem:[%s1106_s9 + $0x18] sm:$0xff] %vm377_vm1, %v730_v43  ;;  %v724_v38 = vmul.f32 %v700_v17, %v632_v20 }
 0x237   : > { %v702_v21 = vmul.f32 %v944_v57, %v694_v28 }
 0x238   : > { %v732_v22 = vsub.f32 %v716_v19, %v724_v38 }
 0x239   : > { %710 = vst.msk [vmem:[%s1101_s30 + $0x38] sm:$0xff] %vm377_vm1, %v702_v21  ;;  %v638_v24 = vpop.xlane.xlu0 %637 }
 0x23a   : > { %740 = vst.msk [vmem:[%s1106_s9 + $0x28] sm:$0xff] %vm377_vm1, %v732_v22  ;;  %v726_v25 = vmul.f32 %v702_v21, %v638_v24 }
 0x23c   : > { %v734_v46 = vsub.f32 %v718_v23, %v726_v25 }
 0x23e   : > { %742 = vst.msk [vmem:[%s1106_s9 + $0x38] sm:$0xff] %vm377_vm1, %v734_v46 }
 0x23f PF: > { %s16_s24 = sadd.s32 1, %s999_s24   ;;  %s1363_s18 = smov %s979_s19 }
 0x240   : > { %p13_p13 = scmp.ge.s32.totalorder %s16_s24, 6   ;;  %s1364_s19 = smov %s1084_s6 }
 0x241   : > { %s1365_s20 = smov %s991_s22  ;;  %s1366_s21 = smov %s995_s23 }
 0x242   : > { %s1367_s22 = smov %s1370_s25  ;;  %s1368_s23 = smov %s1374_s26 }
 0x243   :  { %15 = sbr.rel (!%p13_p13) target bundleno = 4 (0x4), region = 129 }

// kernel: _lambda_.4
= control target key start
LH: loop header
LB: loop body
LE: loop exit
PB: predicated region body
PF: predicated region fallthrough
CT: control target
= control target key end

     0   :  { %s1833_s24 = smov 0   ;;  %s1835_s25 = smov 0   ;;  %s2154_s0 = inlined_call_operand.vmem [shape: f32[2,64,256], index: 0, kind: input, shape index: {}]   ;;  %s2155_s1 = inlined_call_operand.vmem [shape: f32[2,64,1], index: 1, kind: input, shape index: {}]   ;;  %s2156_s2 = inlined_call_operand.vmem [shape: f32[2,64,1], index: 2, kind: input, shape index: {}]   ;;  %s2157_s3 = inlined_call_operand.vmem [shape: bf16[192,64], index: 3, kind: input, shape index: {}]   ;;  %s2158_s4 = inlined_call_operand.vmem [shape: f32[192,1], index: 4, kind: input, shape index: {}]   ;;  %s2159_s5 = inlined_call_operand.vmem [shape: bf16[2,64,256], index: 5, kind: output, shape index: {0}]   ;;  %s2160_s6 = inlined_call_operand.vmem [shape: bf16[2,64,256], index: 6, kind: output, shape index: {1}]   ;;  %s2161_s7 = inlined_call_operand.vmem [shape: bf16[2,64,256], index: 7, kind: output, shape index: {2}]  }
   0x1   :  { %s1837_s26 = smov 0   ;;  %s1839_s27 = smov 0  }
   0x2   :  { %s1841_s28 = smov 0   ;;  %s1843_s29 = smov 0  }
   0x3   :  { %s1845_s30 = smov 0  }
   0x4 LB: > { %s27_s8 = sadd.s32 1, %s1782_s28  ;;  %s30_s9 = sadd.s32 1, %s1786_s29  ;;  %s1790_s30 = sphi %s1845_s30, %s18_s30   ;;  %s1786_s29 = sphi %s1843_s29, %s2168_s29   ;;  %s1782_s28 = sphi %s1841_s28, %s2167_s28   ;;  %s1778_s27 = sphi %s1839_s27, %s2166_s27   ;;  %s1774_s26 = sphi %s1837_s26, %s2165_s26   ;;  %s1770_s25 = sphi %s1835_s25, %s2164_s25   ;;  %s1766_s24 = sphi %s1833_s24, %s2163_s24  }
   0x5   : > { %p28_p0 = scmp.ge.s32.totalorder %s27_s8, 2  ;;  %s1439_s10 = sadd.s32 4294967295, %s1790_s30  }
   0x6   : > { %p46_p1 = scmp.ne.s32.totalorder %s1770_s25, %s1766_s24  ;;  %p47_p2 = scmp.eq.s32.totalorder %s1790_s30, 0 }
   0x7   : > { %s2170_s8 = smov (%p28_p0, %s27_s8), 0  ;;  %s2172_s9 = smov (!%p28_p0, %s30_s9), %s1786_s29 }
   0x8   : > { %p32_p3 = scmp.ge.s32.totalorder %s2172_s9, 2  ;;  %p172_p4 = scmp.eq.s32.totalorder %s1439_s10, 3 }
   0x9   : > { %s35_s11 = ssub.s32 %s1782_s28, %s2170_s8  ;;  %p48_p5 = por %p47_p2, %p46_p1 }
   0xa   : > { %s2174_s9 = smov (%p32_p3, %s2172_s9), 0  ;;  %p1881_p6 = por %p172_p4, %p46_p1 }
   0xb   : > { %s34_s13 = ssub.s32 %s1786_s29, %s2174_s9  ;;  %s39_s15 = sadd.s32 1, %s1770_s25 }
   0xc   : > { %s36_s14 = sor.u32 %s35_s11, %s34_s13  ;;  %p1442_p8 = scmp.ge.s32.totalorder %s1790_s30, 4 }
   0xd   : > { %p37_p7 = scmp.eq.s32.totalorder %s36_s14, 0 }
   0xe   : > { %256 = sbr.rel (%p1442_p8) target bundleno = 31 (0x1f), region = 24 }
   0xf   : > { %s1889_s16 = scalar_select %p37_p7, %s1770_s25, %s39_s15  }
  0x15   : > { %259 = sbr.rel (!%p48_p5) target bundleno = 31 (0x1f), region = 28  ;;  %s261_s17 = sand.u32 (%p48_p5), 1, %s1770_s25  }
  0x16   : > { %s1444_s18 = sshll.u32 (%p48_p5), %s1786_s29, 4  ;;  %s1443_s19 = sshll.u32 (%p48_p5), %s261_s17, 6 }
  0x17   : > { %s265_s20 = sadd.s32 (%p48_p5), %s1782_s28, %s1444_s18  ;;  %s263_s11 = scalar_lea.vmem (%p48_p5), [#allocation2], %s1443_s19 }
  0x18   : > { %s1445_s21 = sshll.u32 (%p48_p5), %s265_s20, 3 }
  0x19   : > { %s267_s10 = scalar_lea.vmem (%p48_p5), %s2154_s0, %s1445_s21 }
  0x1a   : > { %v309_v0 = vld [vmem:[%s267_s10] sm:$0xff] (%p48_p5)  ;;  %v311_v1 = vld [vmem:[%s267_s10 + $0x10] sm:$0xff] (%p48_p5) }
  0x1b   : > { %v313_v2 = vld [vmem:[%s267_s10 + $0x20] sm:$0xff] (%p48_p5)  ;;  %310 = vst [vmem:[%s263_s11] sm:$0xff] (%p48_p5), %v309_v0  ;;  %312 = vst [vmem:[%s263_s11 + $0x8] sm:$0xff] (%p48_p5), %v311_v1  ;;  %v315_v3 = vld [vmem:[%s267_s10 + $0x30] sm:$0xff] (%p48_p5) }
  0x1c   : > { %314 = vst [vmem:[%s263_s11 + $0x10] sm:$0xff] %v313_v2  ;;  %v317_v4 = vld [vmem:[%s267_s10 + $0x40] sm:$0xff]  ;;  %v319_v5 = vld [vmem:[%s267_s10 + $0x50] sm:$0xff]  ;;  %316 = vst [vmem:[%s263_s11 + $0x18] sm:$0xff] %v315_v3 }
  0x1d   : > { %318 = vst [vmem:[%s263_s11 + $0x20] sm:$0xff] %v317_v4  ;;  %320 = vst [vmem:[%s263_s11 + $0x28] sm:$0xff] %v319_v5  ;;  %v321_v6 = vld [vmem:[%s267_s10 + $0x60] sm:$0xff]  ;;  %v323_v7 = vld [vmem:[%s267_s10 + $0x70] sm:$0xff] }
  0x1e   : > { %322 = vst [vmem:[%s263_s11 + $0x30] sm:$0xff] %v321_v6  ;;  %324 = vst [vmem:[%s263_s11 + $0x38] sm:$0xff] %v323_v7 }
  0x1f PF: > { %p1446_p9 = scmp.ge.s32.totalorder %s1790_s30, 1  ;;  %p345_p10 = scmp.lt.s32.totalorder %s1790_s30, 5 }
  0x21   : > { %p346_p11 = pnand %p1446_p9, %p345_p10 }
  0x22   : > { %p400_p12 = scmp.lt.s32.totalorder (!%p346_p11), %s1778_s27, 1  ;;  %v1792_v8 = vmov (!%p346_p11), 0   ;;  %v560_v25 = vld [vmem:[%s2158_s4 + $0x8] sm:$0xff] (!%p346_p11)  ;;  %v559_v26 = vld [vmem:[%s2158_s4] sm:$0xff] (!%p346_p11)  ;;  %v562_v27 = vld [vmem:[%s2158_s4 + $0x18] sm:$0xff] (!%p346_p11)  ;;  %vm763_vm0 = vcmask (!%p346_p11), 523264  }
  0x23   : > { %349 = sbr.rel (%p346_p11) target bundleno = 467 (0x1d3), region = 74  ;;  %1723 = vset.pattern.permute.xlu1 (!%p346_p11), %v1792_v8  ;;  %1722 = vset.pattern.permute.xlu0 (!%p346_p11), %v1792_v8  ;;  %v561_v28 = vld [vmem:[%s2158_s4 + $0x10] sm:$0xff] (!%p346_p11)  ;;  %v1724_v29 = vld [vmem:[%s2157_s3] sm:$0xff] (!%p346_p11)   ;;  %v564_v31 = vld [vmem:[%s2158_s4 + $0x28] sm:$0xff] (!%p346_p11) }
  0x24   : > { %v1725_v30 = vld [vmem:[%s2157_s3 + $0x30] sm:$0xff] (!%p346_p11)   ;;  %1633 = vmatprep.mubr.msk.bf16.mxu0 (!%p346_p11), %vm763_vm0, %v1724_v29  ;;  %v563_v32 = vld [vmem:[%s2158_s4 + $0x20] sm:$0xff] (!%p346_p11)  ;;  %v566_v33 = vld [vmem:[%s2158_s4 + $0x38] sm:$0xff] (!%p346_p11) }
  0x25   : > { %1645 = vmatprep.mubr.msk.bf16.mxu1 (!%p346_p11), %vm763_vm0, %v1725_v30  ;;  %v565_v34 = vld [vmem:[%s2158_s4 + $0x30] sm:$0xff] (!%p346_p11)  ;;  %v568_v35 = vld [vmem:[%s2158_s4 + $0x48] sm:$0xff] (!%p346_p11)  ;;  %v567_v36 = vld [vmem:[%s2158_s4 + $0x40] sm:$0xff] (!%p346_p11) }
  0x26   : > { %v570_v37 = vld [vmem:[%s2158_s4 + $0x58] sm:$0xff] (!%p346_p11)  ;;  %v569_v38 = vld [vmem:[%s2158_s4 + $0x50] sm:$0xff] (!%p346_p11)  ;;  %v572_v39 = vld [vmem:[%s2158_s4 + $0x68] sm:$0xff] (!%p346_p11) }
  0x27   : > { %v571_v40 = vld [vmem:[%s2158_s4 + $0x60] sm:$0xff] (!%p346_p11)  ;;  %v574_v41 = vld [vmem:[%s2158_s4 + $0x78] sm:$0xff] (!%p346_p11)  ;;  %v573_v42 = vld [vmem:[%s2158_s4 + $0x70] sm:$0xff] (!%p346_p11) }
  0x28   : > { %v576_v43 = vld [vmem:[%s2158_s4 + $0x88] sm:$0xff] (!%p346_p11)  ;;  %v575_v44 = vld [vmem:[%s2158_s4 + $0x80] sm:$0xff] (!%p346_p11)  ;;  %v578_v45 = vld [vmem:[%s2158_s4 + $0x98] sm:$0xff] (!%p346_p11) }
  0x29   : > { %v577_v46 = vld [vmem:[%s2158_s4 + $0x90] sm:$0xff] (!%p346_p11)  ;;  %v580_v47 = vld [vmem:[%s2158_s4 + $0xa8] sm:$0xff] (!%p346_p11)  ;;  %v579_v48 = vld [vmem:[%s2158_s4 + $0xa0] sm:$0xff] (!%p346_p11) }
  0x2a   : > { %s401_s13 = scalar_select %p400_p12, %s1778_s27, 1  ;;  %v582_v49 = vld [vmem:[%s2158_s4 + $0xb8] sm:$0xff]  ;;  %v581_v50 = vld [vmem:[%s2158_s4 + $0xb0] sm:$0xff] }
  0x2b   : > { %s1506_s17 = sshll.u32 (%p1881_p6), %s1778_s27, 4 }
  0x2c   : > { %s1514_s14 = sshll.u32 %s401_s13, 6  ;;  %s352_s13 = sand.u32 1, %s1766_s24  }
  0x2d   : > { %s1905_s18 = scalar_lea.vmem %s2156_s2, %s1514_s14  ;;  %s404_s21 = scalar_lea.vmem %s2155_s1, %s1514_s14 }
  0x2e   : > { %v475_v9 = vld [vmem:[%s1905_s18] sm:$0xff]  ;;  %v476_v11 = vld [vmem:[%s1905_s18 + $0x8] sm:$0xff]  ;;  %v422_v13 = vld [vmem:[%s404_s21 + $0x18] sm:$0xff]  ;;  %s1447_s14 = sshll.u32 %s352_s13, 6 }
  0x2f   : > { %v419_v10 = vld [vmem:[%s404_s21] sm:$0xff]  ;;  %485 = vperm.xlu1 %1723, %v475_v9   ;;  %v420_v12 = vld [vmem:[%s404_s21 + $0x8] sm:$0xff]  ;;  %v421_v14 = vld [vmem:[%s404_s21 + $0x10] sm:$0xff]  ;;  %s2001_s15 = scalar_lea.vmem [#allocation2], %s1447_s14  ;;  %s2061_s14 = sshll.u32 %s352_s13, 5 }
  0x30   : > { %429 = vperm.xlu0 %1722, %v419_v10   ;;  %v478_v15 = vld [vmem:[%s1905_s18 + $0x18] sm:$0xff]  ;;  %v477_v16 = vld [vmem:[%s1905_s18 + $0x10] sm:$0xff]  ;;  %v424_v17 = vld [vmem:[%s404_s21 + $0x28] sm:$0xff]  ;;  %s2064_s24 = scalar_lea.vmem [#allocation3], %s2061_s14  ;;  %s2068_s13 = scalar_lea.vmem [#allocation4], %s2061_s14 }
  0x31   : > { %v423_v18 = vld [vmem:[%s404_s21 + $0x20] sm:$0xff]  ;;  %v480_v19 = vld [vmem:[%s1905_s18 + $0x28] sm:$0xff]  ;;  %v426_v21 = vld [vmem:[%s404_s21 + $0x38] sm:$0xff] }
  0x32   : > { %v479_v20 = vld [vmem:[%s1905_s18 + $0x20] sm:$0xff]  ;;  %v425_v22 = vld [vmem:[%s404_s21 + $0x30] sm:$0xff]  ;;  %v482_v23 = vld [vmem:[%s1905_s18 + $0x38] sm:$0xff] }
  0x33   : > { %490 = vperm.xlu1 %1723, %v476_v11   ;;  %v481_v24 = vld [vmem:[%s1905_s18 + $0x30] sm:$0xff]  ;;  %v411_v53 = vld [vmem:[%s2001_s15] sm:$0xff]  ;;  %v412_v54 = vld [vmem:[%s2001_s15 + $0x8] sm:$0xff]  ;;  %s1065_s18 = sadd.s32 (%p1881_p6), %s1774_s26, %s1506_s17 }
  0x34   : > { %434 = vperm.xlu0 %1722, %v420_v12   ;;  %v414_v62 = vld [vmem:[%s2001_s15 + $0x18] sm:$0xff]  ;;  %v413_v0 = vld [vmem:[%s2001_s15 + $0x10] sm:$0xff]  ;;  %v416_v10 = vld [vmem:[%s2001_s15 + $0x28] sm:$0xff]  ;;  %s1507_s19 = sshll.u32 (%p1881_p6), %s1065_s18, 2 }
  0x35   : > { %v415_v12 = vld [vmem:[%s2001_s15 + $0x20] sm:$0xff]  ;;  %s1067_s22 = scalar_lea.vmem (%p1881_p6), %s2159_s5, %s1507_s19 }
  0x37   : > { %444 = vperm.xlu1 %1723, %v422_v13  }
  0x38   : > { %439 = vperm.xlu0 %1722, %v421_v14  }
  0x3b   : > { %500 = vperm.xlu1 %1723, %v478_v15  }
  0x3c   : > { %495 = vperm.xlu0 %1722, %v477_v16  }
  0x3f   : > { %454 = vperm.xlu1 %1723, %v424_v17  }
  0x40   : > { %449 = vperm.xlu0 %1722, %v423_v18  }
  0x43   : > { %510 = vperm.xlu1 %1723, %v480_v19  }
  0x44   : > { %505 = vperm.xlu0 %1722, %v479_v20  }
  0x47   : > { %464 = vperm.xlu1 %1723, %v426_v21   ;;  %v418_v21 = vld [vmem:[%s2001_s15 + $0x38] sm:$0xff] }
  0x48   : > { %459 = vperm.xlu0 %1722, %v425_v22  }
  0x4b   : > { %520 = vperm.xlu1 %1723, %v482_v23   ;;  %v417_v23 = vld [vmem:[%s2001_s15 + $0x30] sm:$0xff]  ;;  %s2075_s15 = scalar_lea.vmem [#allocation5], %s2061_s14 }
  0x4c   : > { %515 = vperm.xlu0 %1722, %v481_v24  }
  0x4f   : > { %590 = vperm.xlu1 %1723, %v560_v25  }
  0x50   : > { %585 = vperm.xlu0 %1722, %v559_v26  }
  0x53   : > { %600 = vperm.xlu1 %1723, %v562_v27  }
  0x54   : > { %595 = vperm.xlu0 %1722, %v561_v28  }
  0x57   : > { %610 = vperm.xlu1 %1723, %v564_v31   ;;  %v1726_v31 = vld [vmem:[%s2157_s3 + $0x8] sm:$0xff]  }
  0x58   : > { %605 = vperm.xlu0 %1722, %v563_v32   ;;  %v1727_v32 = vld [vmem:[%s2157_s3 + $0x38] sm:$0xff]  }
  0x5b   : > { %620 = vperm.xlu1 %1723, %v566_v33   ;;  %v1728_v33 = vld [vmem:[%s2157_s3 + $0x10] sm:$0xff]  }
  0x5c   : > { %615 = vperm.xlu0 %1722, %v565_v34   ;;  %v1729_v34 = vld [vmem:[%s2157_s3 + $0x40] sm:$0xff]  }
  0x5f   : > { %630 = vperm.xlu1 %1723, %v568_v35   ;;  %v1730_v35 = vld [vmem:[%s2157_s3 + $0x18] sm:$0xff]  }
  0x60   : > { %625 = vperm.xlu0 %1722, %v567_v36   ;;  %v1731_v36 = vld [vmem:[%s2157_s3 + $0x48] sm:$0xff]  }
  0x63   : > { %640 = vperm.xlu1 %1723, %v570_v37   ;;  %v1732_v37 = vld [vmem:[%s2157_s3 + $0x20] sm:$0xff]  }
  0x64   : > { %635 = vperm.xlu0 %1722, %v569_v38   ;;  %v1733_v38 = vld [vmem:[%s2157_s3 + $0x50] sm:$0xff]  }
  0x67   : > { %650 = vperm.xlu1 %1723, %v572_v39   ;;  %v1734_v39 = vld [vmem:[%s2157_s3 + $0x28] sm:$0xff]  }
  0x68   : > { %645 = vperm.xlu0 %1722, %v571_v40   ;;  %v1735_v40 = vld [vmem:[%s2157_s3 + $0x58] sm:$0xff]  }
  0x6b   : > { %660 = vperm.xlu1 %1723, %v574_v41  }
  0x6c   : > { %655 = vperm.xlu0 %1722, %v573_v42  }
  0x6f   : > { %670 = vperm.xlu1 %1723, %v576_v43  }
  0x70   : > { %665 = vperm.xlu0 %1722, %v575_v44  }
  0x73   : > { %680 = vperm.xlu1 %1723, %v578_v45  }
  0x74   : > { %675 = vperm.xlu0 %1722, %v577_v46  }
  0x77   : > { %690 = vperm.xlu1 %1723, %v580_v47  }
  0x78   : > { %685 = vperm.xlu0 %1722, %v579_v48  }
  0x7b   : > { %700 = vperm.xlu1 %1723, %v582_v49  }
  0x7c   : > { %695 = vperm.xlu0 %1722, %v581_v50  }
  0xae   : > { %v486_v51 = vpop.permute.xlu1 %485 }
  0xaf   : > { %v430_v52 = vpop.permute.xlu0 %429 }
  0xb0   : > { %v467_v55 = vmul.f32 %v430_v52, %v411_v53 }
  0xb2   : > { %v491_v56 = vpop.permute.xlu1 %490  ;;  %v523_v59 = vadd.f32 %v486_v51, %v467_v55 }
  0xb3   : > { %v435_v57 = vpop.permute.xlu0 %434 }
  0xb4   : > { %v468_v58 = vmul.f32 %v435_v57, %v412_v54 }
  0xb6   : > { %v524_v60 = vadd.f32 %v491_v56, %v468_v58  ;;  %v445_v61 = vpop.permute.xlu1 %444 }
  0xb7   : > { %v440_v63 = vpop.permute.xlu0 %439  ;;  %v470_v2 = vmul.f32 %v445_v61, %v414_v62 }
  0xb8   : > { %v531_v1 = vpack.c.bf16 %v524_v60, %v523_v59  ;;  %v469_v3 = vmul.f32 %v440_v63, %v413_v0 }
  0xba   : > { %1625 = vmatprep.subr.bf16.mxu0 %v531_v1  ;;  %1657 = vmatprep.subr.bf16.mxu1 %v531_v1  ;;  %v501_v4 = vpop.permute.xlu1 %500 }
  0xbb   : > { %v496_v5 = vpop.permute.xlu0 %495  ;;  %1626 = vmatpush3.bf16.msra.mxu0 %v531_v1  ;;  %1661 = vmatpush3.bf16.msra.mxu1 %v531_v1  ;;  %v526_v6 = vadd.f32 %v501_v4, %v470_v2 }
  0xbc   : > { %v525_v7 = vadd.f32 %v496_v5, %v469_v3 }
  0xbe   : > { %v532_v8 = vpack.c.bf16 %v526_v6, %v525_v7  ;;  %v455_v9 = vpop.permute.xlu1 %454 }
  0xbf   : > { %v450_v11 = vpop.permute.xlu0 %449  ;;  %v472_v13 = vmul.f32 %v455_v9, %v416_v10 }
  0xc0   : > { %1627 = vmatprep.subr.bf16.mxu0 %v532_v8  ;;  %1658 = vmatprep.subr.bf16.mxu1 %v532_v8  ;;  %v471_v14 = vmul.f32 %v450_v11, %v415_v12 }
  0xc1   : > { %1628 = vmatpush3.bf16.msra.mxu0 %v532_v8  ;;  %1662 = vmatpush3.bf16.msra.mxu1 %v532_v8 }
  0xc2   : > { %v511_v15 = vpop.permute.xlu1 %510 }
  0xc3   : > { %v506_v16 = vpop.permute.xlu0 %505  ;;  %v528_v17 = vadd.f32 %v511_v15, %v472_v13 }
  0xc4   : > { %v527_v18 = vadd.f32 %v506_v16, %v471_v14 }
  0xc6   : > { %v533_v19 = vpack.c.bf16 %v528_v17, %v527_v18  ;;  %v465_v20 = vpop.permute.xlu1 %464 }
  0xc7   : > { %v460_v22 = vpop.permute.xlu0 %459  ;;  %v474_v24 = vmul.f32 %v465_v20, %v418_v21 }
  0xc8   : > { %1629 = vmatprep.subr.bf16.mxu0 %v533_v19  ;;  %1659 = vmatprep.subr.bf16.mxu1 %v533_v19  ;;  %v473_v25 = vmul.f32 %v460_v22, %v417_v23 }
  0xc9   : > { %1630 = vmatpush3.bf16.msra.mxu0 %v533_v19  ;;  %1663 = vmatpush3.bf16.msra.mxu1 %v533_v19 }
  0xca   : > { %v521_v26 = vpop.permute.xlu1 %520 }
  0xcb   : > { %v516_v27 = vpop.permute.xlu0 %515  ;;  %v530_v28 = vadd.f32 %v521_v26, %v474_v24 }
  0xcc   : > { %v529_v29 = vadd.f32 %v516_v27, %v473_v25 }
  0xce   : > { %v534_v30 = vpack.c.bf16 %v530_v28, %v529_v29  ;;  %v591_v41 = vpop.permute.xlu1 %590 }
  0xcf   : > { %v586_v42 = vpop.permute.xlu0 %585 }
  0xd0   : > { %1631 = vmatprep.subr.bf16.mxu0 %v534_v30  ;;  %1660 = vmatprep.subr.bf16.mxu1 %v534_v30 }
  0xd1   : > { %1632 = vmatpush3.bf16.msra.mxu0 %v534_v30  ;;  %1664 = vmatpush3.bf16.msra.mxu1 %v534_v30 }
  0xd2   : > { %v601_v43 = vpop.permute.xlu1 %600 }
  0xd3   : > { %v596_v44 = vpop.permute.xlu0 %595 }
  0xd4   : > { %1634 = vmatmul.mubr.msk.bf16.vlgmr.msra.gmra.mrb[0].mxu0 %vm763_vm0, %v1726_v31  ;;  %1646 = vmatmul.mubr.msk.bf16.vlgmr.msra.gmra.mrb[0].mxu1 %vm763_vm0, %v1727_v32 }
  0xd5   : > { %1637 = vmatprep.mubr.msk.bf16.mxu0 %vm763_vm0, %v1728_v33  ;;  %1649 = vmatprep.mubr.msk.bf16.mxu1 %vm763_vm0, %v1729_v34 }
  0xd6   : > { %v611_v45 = vpop.permute.xlu1 %610 }
  0xd7   : > { %v606_v46 = vpop.permute.xlu0 %605 }
  0xda   : > { %v621_v47 = vpop.permute.xlu1 %620 }
  0xdb   : > { %v616_v48 = vpop.permute.xlu0 %615 }
  0xdc   : > { %1638 = vmatmul.mubr.msk.bf16.gmra.mrb[4].mxu0 %vm763_vm0, %v1730_v35  ;;  %1650 = vmatmul.mubr.msk.bf16.gmra.mrb[4].mxu1 %vm763_vm0, %v1731_v36 }
  0xdd   : > { %1641 = vmatprep.mubr.msk.bf16.mxu0 %vm763_vm0, %v1732_v37  ;;  %1653 = vmatprep.mubr.msk.bf16.mxu1 %vm763_vm0, %v1733_v38 }
  0xde   : > { %v2051_v49 = vpop.permute.xlu1 %630 }
  0xdf   : > { %v2053_v50 = vpop.permute.xlu0 %625 }
  0xe2   : > { %v2055_v51 = vpop.permute.xlu1 %640 }
  0xe3   : > { %v2057_v52 = vpop.permute.xlu0 %635 }
  0xe4   : > { %1642 = vmatmul.mubr.msk.bf16.gmra.mrb[8].mxu0 %vm763_vm0, %v1734_v39  ;;  %1654 = vmatmul.mubr.msk.bf16.gmra.mrb[8].mxu1 %vm763_vm0, %v1735_v40 }
  0xe6   : > { %v651_v53 = vpop.permute.xlu1 %650 }
  0xe7   : > { %v646_v54 = vpop.permute.xlu0 %645 }
  0xea   : > { %v661_v55 = vpop.permute.xlu1 %660 }
  0xeb   : > { %v656_v56 = vpop.permute.xlu0 %655 }
  0xee   : > { %v671_v57 = vpop.permute.xlu1 %670 }
  0xef   : > { %v666_v58 = vpop.permute.xlu0 %665 }
  0xf2   : > { %v681_v59 = vpop.permute.xlu1 %680 }
  0xf3   : > { %v676_v60 = vpop.permute.xlu0 %675 }
  0xf6   : > { %v691_v17 = vpop.permute.xlu1 %690 }
  0xf7   : > { %v686_v18 = vpop.permute.xlu0 %685 }
  0xfa   : > { %v701_v39 = vpop.permute.xlu1 %700 }
  0xfb   : > { %v696_v40 = vpop.permute.xlu0 %695 }
 0x1a7   : > { %v1635_v61 = vpop.f32.mrb[0].mxu0  ;;  %v1647_v62 = vpop.f32.mrb[0].mxu1 }
 0x1a8   : > { %v834_v63 = vpop.f32.mrb[1].mxu0  ;;  %v882_v0 = vpop.f32.mrb[1].mxu1  ;;  %v843_v3 = vadd.f32 %v1635_v61, %v596_v44  ;;  %v891_v4 = vadd.f32 %v1647_v62, %v656_v56 }
 0x1a9   : > { %v1636_v1 = vpop.f32.mrb[2].mxu0  ;;  %v1648_v2 = vpop.f32.mrb[2].mxu1  ;;  %v835_v9 = vadd.f32 %v834_v63, %v586_v42  ;;  %v883_v10 = vadd.f32 %v882_v0, %v646_v54 }
 0x1aa   : > { %v846_v5 = vadd.f32 %v1636_v1, %v601_v43  ;;  %v894_v6 = vadd.f32 %v1648_v2, %v661_v55  ;;  %v837_v7 = vpop.f32.mrb[3].mxu0  ;;  %v885_v8 = vpop.f32.mrb[3].mxu1 }
 0x1ab   : > { %v838_v11 = vadd.f32 %v837_v7, %v591_v41  ;;  %v886_v12 = vadd.f32 %v885_v8, %v651_v53 }
 0x1ac   : > { %v1548_v13 = vpack.c.bf16 %v846_v5, %v843_v3  ;;  %v1578_v14 = vpack.c.bf16 %v894_v6, %v891_v4 }
 0x1ad   : > { %v1543_v15 = vpack.c.bf16 %v838_v11, %v835_v9  ;;  %v1573_v16 = vpack.c.bf16 %v886_v12, %v883_v10 }
 0x1ae   : > { %1600 = vst [vmem:[%s2064_s24 + $0x8] sm:$0xff] %v1548_v13   ;;  %1605 = vst [vmem:[%s2068_s13 + $0x18] sm:$0xff] %v1578_v14  }
 0x1af   : > { %1544 = vst [vmem:[%s2064_s24] sm:$0xff] %v1543_v15   ;;  %1604 = vst [vmem:[%s2068_s13 + $0x10] sm:$0xff] %v1573_v16   ;;  %v1639_v19 = vpop.f32.mrb[4].mxu0  ;;  %v1651_v20 = vpop.f32.mrb[4].mxu1 }
 0x1b0   : > { %v850_v21 = vpop.f32.mrb[5].mxu0  ;;  %v898_v22 = vpop.f32.mrb[5].mxu1  ;;  %v859_v25 = vadd.f32 %v1639_v19, %v616_v48  ;;  %v907_v26 = vadd.f32 %v1651_v20, %v676_v60 }
 0x1b1   : > { %v1640_v23 = vpop.f32.mrb[6].mxu0  ;;  %v1652_v24 = vpop.f32.mrb[6].mxu1  ;;  %v851_v31 = vadd.f32 %v850_v21, %v606_v46  ;;  %v899_v32 = vadd.f32 %v898_v22, %v666_v58 }
 0x1b2   : > { %v862_v27 = vadd.f32 %v1640_v23, %v621_v47  ;;  %v910_v28 = vadd.f32 %v1652_v24, %v681_v59  ;;  %v853_v29 = vpop.f32.mrb[7].mxu0  ;;  %v901_v30 = vpop.f32.mrb[7].mxu1 }
 0x1b3   : > { %v854_v33 = vadd.f32 %v853_v29, %v611_v45  ;;  %v902_v34 = vadd.f32 %v901_v30, %v671_v57 }
 0x1b4   : > { %v1558_v35 = vpack.c.bf16 %v862_v27, %v859_v25  ;;  %v1588_v36 = vpack.c.bf16 %v910_v28, %v907_v26 }
 0x1b5   : > { %v1553_v37 = vpack.c.bf16 %v854_v33, %v851_v31  ;;  %v1583_v38 = vpack.c.bf16 %v902_v34, %v899_v32 }
 0x1b6   : > { %1602 = vst [vmem:[%s2064_s24 + $0x18] sm:$0xff] %v1558_v35   ;;  %1606 = vst [vmem:[%s2075_s15 + $0x8] sm:$0xff] %v1588_v36  }
 0x1b7   : > { %1601 = vst [vmem:[%s2064_s24 + $0x10] sm:$0xff] %v1553_v37   ;;  %1584 = vst [vmem:[%s2075_s15] sm:$0xff] %v1583_v38   ;;  %v1643_v41 = vpop.f32.mrb[8].mxu0  ;;  %v1655_v42 = vpop.f32.mrb[8].mxu1 }
 0x1b8   : > { %v866_v43 = vpop.f32.mrb[9].mxu0  ;;  %v914_v44 = vpop.f32.mrb[9].mxu1  ;;  %v875_v47 = vadd.f32 %v1643_v41, %v2057_v52  ;;  %v923_v48 = vadd.f32 %v1655_v42, %v696_v40  ;;  %v1089_v52 = vld [vmem:[%s2064_s24 + $0xc] sm:$0xf] (%p1881_p6) }
 0x1b9   : > { %v1644_v45 = vpop.f32.mrb[10].mxu0  ;;  %v1656_v46 = vpop.f32.mrb[10].mxu1  ;;  %v867_v57 = vadd.f32 %v866_v43, %v2053_v50  ;;  %v915_v58 = vadd.f32 %v914_v44, %v686_v18  ;;  %1063 = sbr.rel (!%p1881_p6) target bundleno = 450 (0x1c2), region = 82  ;;  %v1085_v50 = vld [vmem:[%s2064_s24 + $0x4] sm:$0xf] (%p1881_p6) }
 0x1ba   : > { %v878_v53 = vadd.f32 %v1644_v45, %v2055_v51  ;;  %v926_v54 = vadd.f32 %v1656_v46, %v701_v39  ;;  %v869_v55 = vpop.f32.mrb[11].mxu0  ;;  %v917_v56 = vpop.f32.mrb[11].mxu1  ;;  %v1087_v51 = vld [vmem:[%s2064_s24 + $0x8] sm:$0xf] (%p1881_p6)  ;;  %1086 = vst [vmem:[%s1067_s22 + $0x8] sm:$0xf] (%p1881_p6), %v1085_v50 }
 0x1bb   : > { %v870_v59 = vadd.f32 %v869_v55, %v2051_v49  ;;  %v918_v60 = vadd.f32 %v917_v56, %v691_v17  ;;  %v1083_v49 = vld [vmem:[%s2064_s24] sm:$0xf] (%p1881_p6)  ;;  %1088 = vst [vmem:[%s1067_s22 + $0x10] sm:$0xf] (%p1881_p6), %v1087_v51  ;;  %1090 = vst [vmem:[%s1067_s22 + $0x18] sm:$0xf] (%p1881_p6), %v1089_v52 }
 0x1bc   : > { %v1568_v61 = vpack.c.bf16 %v878_v53, %v875_v47  ;;  %v1598_v62 = vpack.c.bf16 %v926_v54, %v923_v48  ;;  %1084 = vst [vmem:[%s1067_s22] sm:$0xf] (%p1881_p6), %v1083_v49 }
 0x1bd   : > { %v1563_v63 = vpack.c.bf16 %v870_v59, %v867_v57  ;;  %v1593_v0 = vpack.c.bf16 %v918_v60, %v915_v58  ;;  %v1095_v3 = vld [vmem:[%s2064_s24 + $0x18] sm:$0xf] (%p1881_p6)  ;;  %v1097_v4 = vld [vmem:[%s2064_s24 + $0x1c] sm:$0xf] (%p1881_p6) }
 0x1be   : > { %1603 = vst [vmem:[%s2068_s13 + $0x8] sm:$0xff] %v1568_v61   ;;  %1608 = vst [vmem:[%s2075_s15 + $0x18] sm:$0xff] %v1598_v62   ;;  %v1091_v1 = vld [vmem:[%s2064_s24 + $0x10] sm:$0xf] (%p1881_p6)  ;;  %v1093_v2 = vld [vmem:[%s2064_s24 + $0x14] sm:$0xf] (%p1881_p6) }
 0x1bf   : > { %1564 = vst [vmem:[%s2068_s13] sm:$0xff] %v1563_v63   ;;  %1607 = vst [vmem:[%s2075_s15 + $0x10] sm:$0xff] %v1593_v0  }
 0x1c0   : > { %1092 = vst [vmem:[%s1067_s22 + $0x20] sm:$0xf] %v1091_v1  ;;  %1094 = vst [vmem:[%s1067_s22 + $0x28] sm:$0xf] %v1093_v2 }
 0x1c1   : > { %1096 = vst [vmem:[%s1067_s22 + $0x30] sm:$0xf] %v1095_v3  ;;  %1098 = vst [vmem:[%s1067_s22 + $0x38] sm:$0xf] %v1097_v4 }
 0x1c2 PF: > { %1137 = sbr.rel (!%p1881_p6) target bundleno = 459 (0x1cb), region = 123  ;;  %s1508_s23 = sshll.u32 (%p1881_p6), %s1778_s27, 4  ;;  %v1165_v9 = vld [vmem:[%s2068_s13 + $0x10] sm:$0xf] (%p1881_p6)  ;;  %v1167_v10 = vld [vmem:[%s2068_s13 + $0x14] sm:$0xf] (%p1881_p6) }
 0x1c3   : > { %s1139_s10 = sadd.s32 (%p1881_p6), %s1774_s26, %s1508_s23  ;;  %v1169_v11 = vld [vmem:[%s2068_s13 + $0x18] sm:$0xf] (%p1881_p6)  ;;  %v1171_v12 = vld [vmem:[%s2068_s13 + $0x1c] sm:$0xf] (%p1881_p6) }
 0x1c4   : > { %s1509_s11 = sshll.u32 (%p1881_p6), %s1139_s10, 2 }
 0x1c5   : > { %s1141_s17 = scalar_lea.vmem (%p1881_p6), %s2160_s6, %s1509_s11 }
 0x1c6   : > { %1166 = vst [vmem:[%s1141_s17 + $0x20] sm:$0xf] (%p1881_p6), %v1165_v9  ;;  %1168 = vst [vmem:[%s1141_s17 + $0x28] sm:$0xf] (%p1881_p6), %v1167_v10 }
 0x1c7   : > { %v1161_v7 = vld [vmem:[%s2068_s13 + $0x8] sm:$0xf] (%p1881_p6)  ;;  %v1163_v8 = vld [vmem:[%s2068_s13 + $0xc] sm:$0xf] (%p1881_p6)  ;;  %1170 = vst [vmem:[%s1141_s17 + $0x30] sm:$0xf] (%p1881_p6), %v1169_v11 }
 0x1c8   : > { %v1157_v5 = vld [vmem:[%s2068_s13] sm:$0xf] (%p1881_p6)  ;;  %v1159_v6 = vld [vmem:[%s2068_s13 + $0x4] sm:$0xf] (%p1881_p6)  ;;  %1162 = vst [vmem:[%s1141_s17 + $0x10] sm:$0xf] (%p1881_p6), %v1161_v7 }
 0x1c9   : > { %1158 = vst [vmem:[%s1141_s17] sm:$0xf] %v1157_v5  ;;  %1160 = vst [vmem:[%s1141_s17 + $0x8] sm:$0xf] %v1159_v6 }
 0x1ca   : > { %1164 = vst [vmem:[%s1141_s17 + $0x18] sm:$0xf] %v1163_v8  ;;  %1172 = vst [vmem:[%s1141_s17 + $0x38] sm:$0xf] %v1171_v12 }
 0x1cb PF: > { %1211 = sbr.rel (!%p1881_p6) target bundleno = 467 (0x1d3), region = 164  ;;  %s1510_s13 = sshll.u32 (%p1881_p6), %s1778_s27, 4  ;;  %v1231_v13 = vld [vmem:[%s2075_s15] sm:$0xf] (%p1881_p6)  ;;  %v1233_v14 = vld [vmem:[%s2075_s15 + $0x4] sm:$0xf] (%p1881_p6) }
 0x1cc   : > { %s1213_s18 = sadd.s32 (%p1881_p6), %s1774_s26, %s1510_s13  ;;  %v1235_v15 = vld [vmem:[%s2075_s15 + $0x8] sm:$0xf] (%p1881_p6)  ;;  %v1237_v16 = vld [vmem:[%s2075_s15 + $0xc] sm:$0xf] (%p1881_p6)  ;;  %v1239_v17 = vld [vmem:[%s2075_s15 + $0x10] sm:$0xf] (%p1881_p6) }
 0x1cd   : > { %s1511_s19 = sshll.u32 (%p1881_p6), %s1213_s18, 2  ;;  %v1241_v18 = vld [vmem:[%s2075_s15 + $0x14] sm:$0xf] (%p1881_p6)  ;;  %v1243_v19 = vld [vmem:[%s2075_s15 + $0x18] sm:$0xf] (%p1881_p6) }
 0x1ce   : > { %s1215_s21 = scalar_lea.vmem (%p1881_p6), %s2161_s7, %s1511_s19  ;;  %v1245_v20 = vld [vmem:[%s2075_s15 + $0x1c] sm:$0xf] (%p1881_p6) }
 0x1cf   : > { %1232 = vst [vmem:[%s1215_s21] sm:$0xf] (%p1881_p6), %v1231_v13  ;;  %1234 = vst [vmem:[%s1215_s21 + $0x8] sm:$0xf] (%p1881_p6), %v1233_v14 }
 0x1d0   : > { %1236 = vst [vmem:[%s1215_s21 + $0x10] sm:$0xf] (%p1881_p6), %v1235_v15  ;;  %1238 = vst [vmem:[%s1215_s21 + $0x18] sm:$0xf] (%p1881_p6), %v1237_v16 }
 0x1d1   : > { %1240 = vst [vmem:[%s1215_s21 + $0x20] sm:$0xf] (%p1881_p6), %v1239_v17  ;;  %1242 = vst [vmem:[%s1215_s21 + $0x28] sm:$0xf] (%p1881_p6), %v1241_v18 }
 0x1d2   : > { %1244 = vst [vmem:[%s1215_s21 + $0x30] sm:$0xf] %v1243_v19  ;;  %1246 = vst [vmem:[%s1215_s21 + $0x38] sm:$0xf] %v1245_v20 }
 0x1d3 PF: > { %s18_s30 = sadd.s32 1, %s1790_s30   ;;  %s2163_s24 = smov %s1770_s25 }
 0x1d4   : > { %p15_p13 = scmp.ge.s32.totalorder %s18_s30, 6   ;;  %s2164_s25 = smov %s1889_s16 }
 0x1d5   : > { %s2165_s26 = smov %s1782_s28  ;;  %s2166_s27 = smov %s1786_s29 }
 0x1d6   : > { %s2167_s28 = smov %s2170_s8  ;;  %s2168_s29 = smov %s2174_s9 }
 0x1d7   :  { %17 = sbr.rel (!%p15_p13) target bundleno = 4 (0x4), region = 266 }

// kernel: _lambda_.5
= control target key start
LH: loop header
LB: loop body
LE: loop exit
PB: predicated region body
PF: predicated region fallthrough
CT: control target
= control target key end

     0   :  { %s2261_s0 = inlined_call_operand.vmem [shape: bf16[2,64,256], index: 0, kind: input, shape index: {}]   ;;  %s2262_s1 = inlined_call_operand.vmem [shape: bf16[2,64,256], index: 1, kind: input, shape index: {}]   ;;  %s2263_s2 = inlined_call_operand.vmem [shape: bf16[2,64,256], index: 2, kind: input, shape index: {}]   ;;  %s2264_s3 = inlined_call_operand.vmem [shape: f32[2,64,256], index: 3, kind: input, shape index: {}]   ;;  %s2265_s4 = inlined_call_operand.vmem [shape: bf16[64,64], index: 4, kind: input, shape index: {}]   ;;  %s2266_s5 = inlined_call_operand.vmem [shape: f32[64,1], index: 5, kind: input, shape index: {}]   ;;  %s2267_s6 = inlined_call_operand.vmem [shape: f32[2,64,256], index: 6, kind: output, shape index: {}]  }
   0x1   :  { %2271 = sst [smem:[#allocation14_spill]] %s2267_s6 }
   0x2   :  { %s1929_s21 = smov 0   ;;  %s1931_s22 = smov 0  }
   0x3   :  { %s1933_s23 = smov 0   ;;  %s1935_s24 = smov 0  }
   0x4   :  { %s1937_s25 = smov 0   ;;  %s1939_s26 = smov 0  }
   0x5   :  { %s1941_s27 = smov 0   ;;  %s1943_s28 = smov 0  }
   0x6   :  { %s1945_s29 = smov 0   ;;  %s1947_s30 = smov 0  }
   0x7   :  { %s1949_s7 = smov 0  }
   0x8 LB: > { %2272 = sst [smem:[#allocation10_spill]] %s1869_s26  ;;  %s28_s8 = sadd.s32 1, %s1877_s28  ;;  %s1889_s7 = sphi %s1949_s7, %s16_s7   ;;  %s1885_s30 = sphi %s1947_s30, %s2293_s30   ;;  %s1881_s29 = sphi %s1945_s29, %s2292_s29   ;;  %s1877_s28 = sphi %s1943_s28, %s2291_s28   ;;  %s1873_s27 = sphi %s1941_s27, %s2290_s27   ;;  %s1869_s26 = sphi %s1939_s26, %s2289_s26   ;;  %s1865_s25 = sphi %s1937_s25, %s2288_s25   ;;  %s1861_s24 = sphi %s1935_s24, %s2287_s24   ;;  %s1857_s23 = sphi %s1933_s23, %s2286_s23   ;;  %s1853_s22 = sphi %s1931_s22, %s2285_s22   ;;  %s1849_s21 = sphi %s1929_s21, %s2284_s21  }
   0x9   : > { %p29_p0 = scmp.ge.s32.totalorder %s28_s8, 2  ;;  %s31_s9 = sadd.s32 1, %s1881_s29 }
   0xa   : > { %p51_p1 = scmp.ne.s32.totalorder %s1861_s24, %s1857_s23  ;;  %p52_p2 = scmp.eq.s32.totalorder %s1889_s7, 0 }
   0xb   : > { %s2295_s8 = smov (%p29_p0, %s28_s8), 0  ;;  %s2297_s9 = smov (!%p29_p0, %s31_s9), %s1881_s29 }
   0xc   : > { %2273 = sst [smem:[#allocation11_spill]] %s2295_s8  ;;  %p33_p3 = scmp.ge.s32.totalorder %s2297_s9, 2 }
   0xd   : > { %s35_s10 = sadd.s32 1, %s1885_s30  ;;  %s1496_s11 = sadd.s32 4294967295, %s1889_s7  }
   0xe   : > { %p1997_p4 = por %p52_p2, %p51_p1  ;;  %s2299_s9 = smov (%p33_p3, %s2297_s9), 0 }
   0xf   : > { %2275 = sst [smem:[#allocation12_spill]] %s2299_s9  ;;  %s2301_s10 = smov (!%p33_p3, %s35_s10), %s1885_s30 }
  0x10   : > { %s68_s13 = ssub.s32 %s1877_s28, %s2295_s8  ;;  %p79_p5 = scmp.ne.s32.totalorder %s1853_s22, %s1849_s21 }
  0x11   : > { %p37_p6 = scmp.ge.s32.totalorder %s2301_s10, 2  ;;  %p209_p7 = scmp.eq.s32.totalorder %s1496_s11, 7 }
  0x12   : > { %s40_s14 = ssub.s32 %s1881_s29, %s2299_s9  ;;  %p2010_p8 = por %p79_p5, %p52_p2 }
  0x13   : > { %s2303_s10 = smov (%p37_p6, %s2301_s10), 0  ;;  %s44_s16 = sadd.s32 1, %s1861_s24 }
  0x14   : > { %2277 = sst [smem:[#allocation13_spill]] %s2303_s10  ;;  %p2020_p9 = por %p209_p7, %p51_p1 }
  0x15   : > { %s39_s18 = ssub.s32 %s1885_s30, %s2303_s10  ;;  %s72_s19 = sadd.s32 1, %s1853_s22 }
  0x16   : > { %s41_s20 = sor.u32 %s40_s14, %s39_s18  ;;  %s69_s8 = sor.u32 %s68_s13, %s39_s18 }
  0x17   : > { %p42_p10 = scmp.eq.s32.totalorder %s41_s20, 0  ;;  %p70_p11 = scmp.eq.s32.totalorder %s69_s8, 0 }
  0x18   : > { %p1499_p12 = scmp.ge.s32.totalorder %s1889_s7, 8 }
  0x19   : > { %s2028_s11 = scalar_select %p42_p10, %s1861_s24, %s44_s16  }
  0x1a   : > { %s2031_s9 = scalar_select %p70_p11, %s1853_s22, %s72_s19  }
  0x1b   : > { %237 = sbr.rel (%p1499_p12) target bundleno = 77 (0x4d), region = 24 }
  0x22   : > { %240 = sbr.rel (!%p1997_p4) target bundleno = 45 (0x2d), region = 28  ;;  %s242_s6 = sand.u32 (%p1997_p4), 1, %s1861_s24  }
  0x23   : > { %s1501_s10 = sshll.u32 (%p1997_p4), %s1885_s30, 4  ;;  %s1500_s26 = sshll.u32 (%p1997_p4), %s242_s6, 5 }
  0x24   : > { %s246_s14 = sadd.s32 (%p1997_p4), %s1881_s29, %s1501_s10  ;;  %s244_s19 = scalar_lea.vmem (%p1997_p4), [#allocation5], %s1500_s26 }
  0x25   : > { %s1502_s13 = sshll.u32 (%p1997_p4), %s246_s14, 2 }
  0x26   : > { %s248_s16 = scalar_lea.vmem (%p1997_p4), %s2261_s0, %s1502_s13 }
  0x27   : > { %v264_v0 = vld [vmem:[%s248_s16] sm:$0xf] (%p1997_p4)  ;;  %v266_v1 = vld [vmem:[%s248_s16 + $0x8] sm:$0xf] (%p1997_p4)  ;;  %v268_v2 = vld [vmem:[%s248_s16 + $0x10] sm:$0xf] (%p1997_p4) }
  0x28   : > { %265 = vst [vmem:[%s244_s19] sm:$0xf] (%p1997_p4), %v264_v0  ;;  %267 = vst [vmem:[%s244_s19 + $0x4] sm:$0xf] (%p1997_p4), %v266_v1  ;;  %v270_v3 = vld [vmem:[%s248_s16 + $0x18] sm:$0xf] (%p1997_p4) }
  0x29   : > { %269 = vst [vmem:[%s244_s19 + $0x8] sm:$0xf] %v268_v2  ;;  %v272_v4 = vld [vmem:[%s248_s16 + $0x20] sm:$0xf]  ;;  %v274_v5 = vld [vmem:[%s248_s16 + $0x28] sm:$0xf] }
  0x2a   : > { %271 = vst [vmem:[%s244_s19 + $0xc] sm:$0xf] %v270_v3  ;;  %273 = vst [vmem:[%s244_s19 + $0x10] sm:$0xf] %v272_v4  ;;  %v276_v6 = vld [vmem:[%s248_s16 + $0x30] sm:$0xf] }
  0x2b   : > { %275 = vst [vmem:[%s244_s19 + $0x14] sm:$0xf] %v274_v5  ;;  %v278_v7 = vld [vmem:[%s248_s16 + $0x38] sm:$0xf]  ;;  %277 = vst [vmem:[%s244_s19 + $0x18] sm:$0xf] %v276_v6 }
  0x2c   : > { %279 = vst [vmem:[%s244_s19 + $0x1c] sm:$0xf] %v278_v7 }
  0x2d PF: > { %318 = sbr.rel (!%p2010_p8) target bundleno = 56 (0x38), region = 69  ;;  %s320_s6 = sand.u32 (%p2010_p8), 1, %s1853_s22  }
  0x2e   : > { %s1504_s26 = sshll.u32 (%p2010_p8), %s1885_s30, 4  ;;  %s1503_s10 = sshll.u32 (%p2010_p8), %s320_s6, 5 }
  0x2f   : > { %s324_s20 = sadd.s32 (%p2010_p8), %s1877_s28, %s1504_s26  ;;  %s322_s16 = scalar_lea.vmem (%p2010_p8), [#allocation6], %s1503_s10 }
  0x30   : > { %s1505_s14 = sshll.u32 (%p2010_p8), %s324_s20, 2 }
  0x31   : > { %s326_s8 = scalar_lea.vmem (%p2010_p8), %s2262_s1, %s1505_s14 }
  0x32   : > { %v342_v8 = vld [vmem:[%s326_s8] sm:$0xf] (%p2010_p8)  ;;  %v344_v9 = vld [vmem:[%s326_s8 + $0x8] sm:$0xf] (%p2010_p8)  ;;  %v346_v10 = vld [vmem:[%s326_s8 + $0x10] sm:$0xf] (%p2010_p8) }
  0x33   : > { %343 = vst [vmem:[%s322_s16] sm:$0xf] (%p2010_p8), %v342_v8  ;;  %345 = vst [vmem:[%s322_s16 + $0x4] sm:$0xf] (%p2010_p8), %v344_v9  ;;  %v348_v11 = vld [vmem:[%s326_s8 + $0x18] sm:$0xf] (%p2010_p8) }
  0x34   : > { %347 = vst [vmem:[%s322_s16 + $0x8] sm:$0xf] %v346_v10  ;;  %v350_v12 = vld [vmem:[%s326_s8 + $0x20] sm:$0xf]  ;;  %v352_v13 = vld [vmem:[%s326_s8 + $0x28] sm:$0xf] }
  0x35   : > { %349 = vst [vmem:[%s322_s16 + $0xc] sm:$0xf] %v348_v11  ;;  %351 = vst [vmem:[%s322_s16 + $0x10] sm:$0xf] %v350_v12  ;;  %v354_v14 = vld [vmem:[%s326_s8 + $0x30] sm:$0xf] }
  0x36   : > { %353 = vst [vmem:[%s322_s16 + $0x14] sm:$0xf] %v352_v13  ;;  %v356_v15 = vld [vmem:[%s326_s8 + $0x38] sm:$0xf]  ;;  %355 = vst [vmem:[%s322_s16 + $0x18] sm:$0xf] %v354_v14 }
  0x37   : > { %357 = vst [vmem:[%s322_s16 + $0x1c] sm:$0xf] %v356_v15 }
  0x38 PF: > { %396 = sbr.rel (!%p2010_p8) target bundleno = 67 (0x43), region = 110  ;;  %s398_s19 = sand.u32 (%p2010_p8), 1, %s1853_s22  }
  0x39   : > { %s1507_s6 = sshll.u32 (%p2010_p8), %s1885_s30, 4  ;;  %s1506_s26 = sshll.u32 (%p2010_p8), %s398_s19, 5 }
  0x3a   : > { %s402_s10 = sadd.s32 (%p2010_p8), %s1877_s28, %s1507_s6  ;;  %s400_s8 = scalar_lea.vmem (%p2010_p8), [#allocation7], %s1506_s26 }
  0x3b   : > { %s1508_s20 = sshll.u32 (%p2010_p8), %s402_s10, 2 }
  0x3c   : > { %s404_s18 = scalar_lea.vmem (%p2010_p8), %s2263_s2, %s1508_s20 }
  0x3d   : > { %v420_v16 = vld [vmem:[%s404_s18] sm:$0xf] (%p2010_p8)  ;;  %v422_v17 = vld [vmem:[%s404_s18 + $0x8] sm:$0xf] (%p2010_p8)  ;;  %v424_v18 = vld [vmem:[%s404_s18 + $0x10] sm:$0xf] (%p2010_p8) }
  0x3e   : > { %421 = vst [vmem:[%s400_s8] sm:$0xf] (%p2010_p8), %v420_v16  ;;  %423 = vst [vmem:[%s400_s8 + $0x4] sm:$0xf] (%p2010_p8), %v422_v17  ;;  %v426_v19 = vld [vmem:[%s404_s18 + $0x18] sm:$0xf] (%p2010_p8) }
  0x3f   : > { %425 = vst [vmem:[%s400_s8 + $0x8] sm:$0xf] %v424_v18  ;;  %v428_v20 = vld [vmem:[%s404_s18 + $0x20] sm:$0xf]  ;;  %v430_v21 = vld [vmem:[%s404_s18 + $0x28] sm:$0xf] }
  0x40   : > { %427 = vst [vmem:[%s400_s8 + $0xc] sm:$0xf] %v426_v19  ;;  %429 = vst [vmem:[%s400_s8 + $0x10] sm:$0xf] %v428_v20  ;;  %v432_v22 = vld [vmem:[%s404_s18 + $0x30] sm:$0xf] }
  0x41   : > { %431 = vst [vmem:[%s400_s8 + $0x14] sm:$0xf] %v430_v21  ;;  %v434_v23 = vld [vmem:[%s404_s18 + $0x38] sm:$0xf]  ;;  %433 = vst [vmem:[%s400_s8 + $0x18] sm:$0xf] %v432_v22 }
  0x42   : > { %435 = vst [vmem:[%s400_s8 + $0x1c] sm:$0xf] %v434_v23 }
  0x43 PF: > { %474 = sbr.rel (!%p1997_p4) target bundleno = 77 (0x4d), region = 151  ;;  %s476_s15 = sand.u32 (%p1997_p4), 1, %s1861_s24  }
  0x44   : > { %s1510_s16 = sshll.u32 (%p1997_p4), %s1885_s30, 4  ;;  %s1509_s19 = sshll.u32 (%p1997_p4), %s476_s15, 6 }
  0x45   : > { %s480_s6 = sadd.s32 (%p1997_p4), %s1881_s29, %s1510_s16  ;;  %s478_s13 = scalar_lea.vmem (%p1997_p4), [#allocation8], %s1509_s19 }
  0x46   : > { %s1511_s26 = sshll.u32 (%p1997_p4), %s480_s6, 3 }
  0x47   : > { %s482_s14 = scalar_lea.vmem (%p1997_p4), %s2264_s3, %s1511_s26 }
  0x48   : > { %v524_v24 = vld [vmem:[%s482_s14] sm:$0xff] (%p1997_p4)  ;;  %v526_v25 = vld [vmem:[%s482_s14 + $0x10] sm:$0xff] (%p1997_p4) }
  0x49   : > { %v528_v26 = vld [vmem:[%s482_s14 + $0x20] sm:$0xff] (%p1997_p4)  ;;  %525 = vst [vmem:[%s478_s13] sm:$0xff] (%p1997_p4), %v524_v24  ;;  %527 = vst [vmem:[%s478_s13 + $0x8] sm:$0xff] (%p1997_p4), %v526_v25  ;;  %v530_v27 = vld [vmem:[%s482_s14 + $0x30] sm:$0xff] (%p1997_p4) }
  0x4a   : > { %529 = vst [vmem:[%s478_s13 + $0x10] sm:$0xff] %v528_v26  ;;  %v532_v28 = vld [vmem:[%s482_s14 + $0x40] sm:$0xff]  ;;  %v534_v29 = vld [vmem:[%s482_s14 + $0x50] sm:$0xff]  ;;  %531 = vst [vmem:[%s478_s13 + $0x18] sm:$0xff] %v530_v27 }
  0x4b   : > { %533 = vst [vmem:[%s478_s13 + $0x20] sm:$0xff] %v532_v28  ;;  %535 = vst [vmem:[%s478_s13 + $0x28] sm:$0xff] %v534_v29  ;;  %v536_v30 = vld [vmem:[%s482_s14 + $0x60] sm:$0xff]  ;;  %v538_v31 = vld [vmem:[%s482_s14 + $0x70] sm:$0xff] }
  0x4c   : > { %537 = vst [vmem:[%s478_s13 + $0x30] sm:$0xff] %v536_v30  ;;  %539 = vst [vmem:[%s478_s13 + $0x38] sm:$0xff] %v538_v31 }
  0x4d PF: > { %p1512_p13 = scmp.ge.s32.totalorder %s1889_s7, 1  ;;  %p544_p0 = scmp.lt.s32.totalorder %s1889_s7, 9 }
  0x4f   : > { %p545_p1 = pnand %p1512_p13, %p544_p0 }
  0x50   : > { %s551_s12 = sand.u32 (!%p545_p1), 1, %s1857_s23   ;;  %s558_s18 = sand.u32 (!%p545_p1), 1, %s1849_s21  }
  0x51   : > { %548 = sbr.rel (%p545_p1) target bundleno = 994 (0x3e2), region = 189  ;;  %s1513_s8 = sshll.u32 (!%p545_p1), %s551_s12, 5 }
  0x52   : > { %s1514_s15 = sshll.u32 (!%p545_p1), %s558_s18, 5  ;;  %s1516_s16 = sshll.u32 (!%p545_p1), %s551_s12, 6 }
  0x53   : > { %s2070_s19 = scalar_lea.vmem (!%p545_p1), [#allocation5], %s1513_s8  ;;  %s2072_s6 = scalar_lea.vmem (!%p545_p1), [#allocation6], %s1514_s15 }
  0x54   : > { %s2074_s26 = scalar_lea.vmem (!%p545_p1), [#allocation7], %s1514_s15  ;;  %s2076_s10 = scalar_lea.vmem (!%p545_p1), [#allocation8], %s1516_s16 }
  0x55   : > { %s2078_s20 = scalar_lea.vmem (!%p545_p1), [#allocation9], %s1516_s16  ;;  %p1518_p2 = scmp.ne.s32.totalorder (!%p545_p1), %s1865_s25, 0 }
  0x58   : > { %616 = sbr.rel (%p1518_p2) target bundleno = 95 (0x5f), region = 209  ;;  %v1891_v32 = vmov (!%p1518_p2), -inf   ;;  %v1892_v33 = vmov (!%p1518_p2), 0.0  }
  0x59   : > { %617 = vst [vmem:[#allocation2] sm:$0x1] (!%p1518_p2), %v1891_v32  ;;  %618 = vst [vmem:[#allocation3] sm:$0x1] (!%p1518_p2), %v1892_v33 }
  0x5a   : > { %619 = vst [vmem:[#allocation4] sm:$0xff] (!%p1518_p2), %v1892_v33  ;;  %620 = vst [vmem:[#allocation4 + $0x8] sm:$0xff] (!%p1518_p2), %v1892_v33 }
  0x5b   : > { %621 = vst [vmem:[#allocation4 + $0x10] sm:$0xff] (!%p1518_p2), %v1892_v33  ;;  %622 = vst [vmem:[#allocation4 + $0x18] sm:$0xff] (!%p1518_p2), %v1892_v33 }
  0x5c   : > { %623 = vst [vmem:[#allocation4 + $0x20] sm:$0xff] (!%p1518_p2), %v1892_v33  ;;  %624 = vst [vmem:[#allocation4 + $0x28] sm:$0xff] (!%p1518_p2), %v1892_v33 }
  0x5d   : > { %625 = vst [vmem:[#allocation4 + $0x30] sm:$0xff] (!%p1518_p2), %v1892_v33  ;;  %626 = vst [vmem:[#allocation4 + $0x38] sm:$0xff] (!%p1518_p2), %v1892_v33 }
  0x5f PF: > { %v1749_v34 = vld [vmem:[%s2072_s6] sm:$0xff]   ;;  %v1750_v35 = vld [vmem:[%s2072_s6 + $0x8] sm:$0xff]   ;;  %v1751_v38 = vld [vmem:[%s2072_s6 + $0x10] sm:$0xff]   ;;  %vm715_vm0 = vcmask 523264   ;;  %v864_v20 = vlaneseq  ;;  %p1539_p3 = scmp.ne.s32.totalorder %s1865_s25, 1 }
  0x60   : > { %675 = vxpose.xlu0.c.b16.start [1/4] (short) %v1749_v34, 128  ;;  %v1753_v36 = vld [vmem:[%s2070_s19] sm:$0xff]   ;;  %v1754_v37 = vld [vmem:[%s2070_s19 + $0x8] sm:$0xff]   ;;  %v1755_v39 = vld [vmem:[%s2070_s19 + $0x10] sm:$0xff]  }
  0x61   : > { %1585 = vmatprep.subr.bf16.mxu0 %v1753_v36  ;;  %v1752_v40 = vld [vmem:[%s2072_s6 + $0x18] sm:$0xff]   ;;  %v1757_v50 = vld [vmem:[%s2074_s26] sm:$0xff]   ;;  %v865_v23 = vshrl.u32 %v864_v20, 7 }
  0x62   : > { %1586 = vmatpush3.bf16.msra.mxu0 %v1753_v36  ;;  %v1756_v41 = vld [vmem:[%s2070_s19 + $0x18] sm:$0xff]   ;;  %1625 = vmatprep.mubr.bf16.mxu1 %v1757_v50 }
  0x63   : > { %1587 = vmatprep.subr.bf16.mxu0 %v1754_v37  ;;  %v837_v25 = vld [vmem:[#allocation2] sm:$0x1]  ;;  %v2125_v27 = vsub.s32 0, %v865_v23 }
  0x64   : > { %676 = vxpose.xlu0.c.b16.cont [2/4] (short) %v1750_v35, 128 }
  0x66   : > { %1588 = vmatpush3.bf16.msra.mxu0 %v1754_v37 }
  0x67   : > { %1589 = vmatprep.subr.bf16.mxu0 %v1755_v39 }
  0x68   : > { %677 = vxpose.xlu0.c.b16.cont [3/4] (short) %v1751_v38, 128 }
  0x6a   : > { %1590 = vmatpush3.bf16.msra.mxu0 %v1755_v39 }
  0x6b   : > { %1591 = vmatprep.subr.bf16.mxu0 %v1756_v41 }
  0x6c   : > { %678 = vxpose.xlu0.c.b16.end [4/4] (short) %v1752_v40, 128 }
  0x6e   : > { %1592 = vmatpush3.bf16.msra.mxu0 %v1756_v41 }
  0xc6   : > { %v683_v42 = vpop.trf.xlu0 }
  0xc7   : > { %1593 = vmatprep.mubr.msk.bf16.mxu0 %vm715_vm0, %v683_v42 }
  0xca   : > { %v684_v43 = vpop.trf.xlu0 }
  0xcb   : > { %1594 = vmatmul.mubr.msk.bf16.vlgmr.msra.gmra.mrb[0].mxu0 %vm715_vm0, %v684_v43 }
  0xce   : > { %v685_v44 = vpop.trf.xlu0 }
  0xcf   : > { %1597 = vmatprep.mubr.msk.bf16.mxu0 %vm715_vm0, %v685_v44 }
  0xd2   : > { %v686_v45 = vpop.trf.xlu0 }
  0xd3   : > { %1598 = vmatmul.mubr.msk.bf16.gmra.mrb[4].mxu0 %vm715_vm0, %v686_v45 }
  0xd6   : > { %v687_v46 = vpop.trf.xlu0 }
  0xd7   : > { %1601 = vmatprep.mubr.msk.bf16.mxu0 %vm715_vm0, %v687_v46 }
  0xda   : > { %v688_v47 = vpop.trf.xlu0 }
  0xdb   : > { %1602 = vmatmul.mubr.msk.bf16.gmra.mrb[8].mxu0 %vm715_vm0, %v688_v47 }
  0xde   : > { %v689_v48 = vpop.trf.xlu0 }
  0xdf   : > { %1605 = vmatprep.mubr.msk.bf16.mxu0 %vm715_vm0, %v689_v48 }
  0xe2   : > { %v690_v49 = vpop.trf.xlu0 }
  0xe3   : > { %1606 = vmatmul.mubr.msk.bf16.gmra.mrb[12].mxu0 %vm715_vm0, %v690_v49 }
 0x19e   : > { %v2098_v51 = vpop.f32.mrb[0].mxu0 }
 0x19f   : > { %v774_v52 = vpop.f32.mrb[1].mxu0 }
 0x1a0   : > { %v2100_v53 = vpop.f32.mrb[2].mxu0 }
 0x1a1   : > { %v777_v54 = vpop.f32.mrb[3].mxu0 }
 0x1a6   : > { %v2102_v55 = vpop.f32.mrb[4].mxu0 }
 0x1a7   : > { %v840_v56 = vmax.f32 %v2098_v51, %v2102_v55  ;;  %v790_v57 = vpop.f32.mrb[5].mxu0 }
 0x1a8   : > { %v838_v58 = vmax.f32 %v774_v52, %v790_v57  ;;  %v2106_v59 = vpop.f32.mrb[6].mxu0 }
 0x1a9   : > { %v841_v60 = vmax.f32 %v2100_v53, %v2106_v59  ;;  %v793_v61 = vpop.f32.mrb[7].mxu0 }
 0x1aa   : > { %v839_v62 = vmax.f32 %v777_v54, %v793_v61 }
 0x1ae   : > { %v2110_v63 = vpop.f32.mrb[8].mxu0 }
 0x1af   : > { %v844_v0 = vmax.f32 %v840_v56, %v2110_v63  ;;  %v806_v1 = vpop.f32.mrb[9].mxu0 }
 0x1b0   : > { %v842_v2 = vmax.f32 %v838_v58, %v806_v1  ;;  %v2113_v3 = vpop.f32.mrb[10].mxu0 }
 0x1b1   : > { %v845_v4 = vmax.f32 %v841_v60, %v2113_v3  ;;  %v809_v5 = vpop.f32.mrb[11].mxu0 }
 0x1b2   : > { %v843_v6 = vmax.f32 %v839_v62, %v809_v5 }
 0x1b6   : > { %v2116_v7 = vpop.f32.mrb[12].mxu0 }
 0x1b7   : > { %v848_v8 = vmax.f32 %v844_v0, %v2116_v7  ;;  %v2119_v9 = vpop.f32.mrb[13].mxu0 }
 0x1b8   : > { %v846_v10 = vmax.f32 %v842_v2, %v2119_v9  ;;  %v2122_v11 = vpop.f32.mrb[14].mxu0 }
 0x1b9   : > { %v849_v12 = vmax.f32 %v845_v4, %v2122_v11  ;;  %v825_v13 = vpop.f32.mrb[15].mxu0 }
 0x1ba   : > { %v847_v14 = vmax.f32 %v843_v6, %v825_v13 }
 0x1bb   : > { %v851_v15 = vmax.f32 %v848_v8, %v849_v12 }
 0x1bc   : > { %v850_v16 = vmax.f32 %v846_v10, %v847_v14 }
 0x1be   : > { %v852_v17 = vmax.f32 %v850_v16, %v851_v15 }
 0x1c0   : > { %v853_v18 = vrot.slane %v852_v17, 4 }
 0x1c2   : > { %v854_v19 = vmax.f32 %v852_v17, %v853_v18 }
 0x1c4   : > { %v855_v21 = vrot.slane %v854_v19, 2 }
 0x1c6   : > { %v856_v22 = vmax.f32 %v854_v19, %v855_v21 }
 0x1c8   : > { %v857_v24 = vrot.slane %v856_v22, 1 }
 0x1ca   : > { %v858_v26 = vmax.f32 %v856_v22, %v857_v24 }
 0x1cc   : > { %v859_v28 = vmax.f32 %v837_v25, %v858_v26 }
 0x1ce   : > { %v860_v29 = vsub.f32 %v837_v25, %v859_v28  ;;  %v867_v30 = vrot.slane %v859_v28, %v2125_v27  ;;  %1077 = vst [vmem:[#allocation2] sm:$0x1] %v859_v28 }
 0x1d0   : > { %v861_v31 = vmul.f32 1.442695, %v860_v29  ;;  %v869_v32 = vsub.f32 %v774_v52, %v867_v30  ;;  %v870_v33 = vsub.f32 %v777_v54, %v867_v30  ;;  %v871_v34 = vsub.f32 %v2098_v51, %v867_v30 }
 0x1d1   : > { %v872_v35 = vsub.f32 %v2100_v53, %v867_v30  ;;  %v873_v36 = vsub.f32 %v790_v57, %v867_v30  ;;  %v874_v37 = vsub.f32 %v793_v61, %v867_v30  ;;  %v875_v38 = vsub.f32 %v2102_v55, %v867_v30 }
 0x1d2   : > { %1761 = vpow2.f32 %v861_v31  ;;  %v876_v39 = vsub.f32 %v2106_v59, %v867_v30  ;;  %v877_v40 = vsub.f32 %v806_v1, %v867_v30  ;;  %v878_v41 = vsub.f32 %v809_v5, %v867_v30 }
 0x1d3   : > { %v879_v42 = vsub.f32 %v2110_v63, %v867_v30  ;;  %v880_v43 = vsub.f32 %v2113_v3, %v867_v30  ;;  %v881_v44 = vsub.f32 %v2119_v9, %v867_v30  ;;  %v882_v45 = vsub.f32 %v825_v13, %v867_v30 }
 0x1d4   : > { %v883_v46 = vsub.f32 %v2116_v7, %v867_v30  ;;  %v885_v47 = vmul.f32 1.442695, %v869_v32  ;;  %v887_v48 = vmul.f32 1.442695, %v870_v33  ;;  %v889_v49 = vmul.f32 1.442695, %v871_v34 }
 0x1d5   : > { %v891_v50 = vmul.f32 1.442695, %v872_v35  ;;  %v884_v51 = vsub.f32 %v2122_v11, %v867_v30  ;;  %v893_v52 = vmul.f32 1.442695, %v873_v36  ;;  %v895_v53 = vmul.f32 1.442695, %v874_v37 }
 0x1d6   : > { %1763 = vpow2.f32 %v885_v47  ;;  %v897_v54 = vmul.f32 1.442695, %v875_v38  ;;  %v899_v55 = vmul.f32 1.442695, %v876_v39  ;;  %v901_v56 = vmul.f32 1.442695, %v877_v40 }
 0x1d7   : > { %1765 = vpow2.f32 %v887_v48  ;;  %v903_v57 = vmul.f32 1.442695, %v878_v41  ;;  %v905_v59 = vmul.f32 1.442695, %v879_v42  ;;  %v907_v60 = vmul.f32 1.442695, %v880_v43 }
 0x1d8   : > { %1767 = vpow2.f32 %v889_v49  ;;  %v909_v62 = vmul.f32 1.442695, %v881_v44  ;;  %v911_v63 = vmul.f32 1.442695, %v882_v45  ;;  %v913_v1 = vmul.f32 1.442695, %v883_v46 }
 0x1d9   : > { %1769 = vpow2.f32 %v891_v50  ;;  %v915_v3 = vmul.f32 1.442695, %v884_v51  ;;  %v1758_v43 = vld [vmem:[%s2074_s26 + $0x8] sm:$0xff]   ;;  %v1759_v44 = vld [vmem:[%s2074_s26 + $0x10] sm:$0xff]   ;;  %v917_v48 = vld [vmem:[#allocation3] sm:$0x1] }
 0x1da   : > { %1771 = vpow2.f32 %v893_v52  ;;  %v1760_v50 = vld [vmem:[%s2074_s26 + $0x18] sm:$0xff]  }
 0x1db   : > { %1773 = vpow2.f32 %v895_v53 }
 0x1dc   : > { %v2137_v58 = vpop.eup %1761  ;;  %1775 = vpow2.f32 %v897_v54  ;;  %v944_v54 = vld [vmem:[#allocation4 + $0x10] sm:$0xff] }
 0x1dd   : > { %1777 = vpow2.f32 %v899_v55  ;;  %v2141_v61 = vrot.slane %v2137_v58, %v2125_v27  ;;  %v918_v51 = vmul.f32 %v2137_v58, %v917_v48  ;;  %v942_v55 = vld [vmem:[#allocation4] sm:$0xff] }
 0x1de   : > { %1779 = vpow2.f32 %v901_v56  ;;  %v945_v56 = vld [vmem:[#allocation4 + $0x18] sm:$0xff] }
 0x1df   : > { %1781 = vpow2.f32 %v903_v57  ;;  %v958_v57 = vmul.f32 %v2141_v61, %v944_v54 }
 0x1e0   : > { %v1764_v0 = vpop.eup %1763  ;;  %1783 = vpow2.f32 %v905_v59  ;;  %v943_v59 = vld [vmem:[#allocation4 + $0x8] sm:$0xff] }
 0x1e1   : > { %v1766_v2 = vpop.eup %1765  ;;  %1785 = vpow2.f32 %v907_v60  ;;  %v957_v58 = vmul.f32 %v2141_v61, %v943_v59 }
 0x1e2   : > { %v1768_v4 = vpop.eup %1767  ;;  %1787 = vpow2.f32 %v909_v62  ;;  %v919_v5 = vadd.f32 %v1766_v2, %v1764_v0  ;;  %v964_v6 = vpack.c.bf16 %v1766_v2, %v1764_v0  ;;  %v956_v62 = vmul.f32 %v2141_v61, %v942_v55 }
 0x1e3   : > { %v1770_v7 = vpop.eup %1769  ;;  %1789 = vpow2.f32 %v911_v63 }
 0x1e4   : > { %v1772_v8 = vpop.eup %1771  ;;  %1791 = vpow2.f32 %v913_v1  ;;  %v920_v9 = vadd.f32 %v1768_v4, %v919_v5  ;;  %1609 = vmatprep.subr.bf16.mxu1 %v964_v6  ;;  %v965_v10 = vpack.c.bf16 %v1770_v7, %v1768_v4  ;;  %v959_v1 = vmul.f32 %v2141_v61, %v945_v56  ;;  %v1799_v56 = vld [vmem:[%s2265_s4 + $0x8] sm:$0xff] (!%p1539_p3)  }
 0x1e5   : > { %v1774_v11 = vpop.eup %1773  ;;  %1610 = vmatpush3.bf16.msra.mxu1 %v964_v6  ;;  %1793 = vpow2.f32 %v915_v3 }
 0x1e6   : > { %v1776_v12 = vpop.eup %1775  ;;  %v921_v13 = vadd.f32 %v1770_v7, %v920_v9  ;;  %1611 = vmatprep.subr.bf16.mxu1 %v965_v10  ;;  %v966_v14 = vpack.c.bf16 %v1774_v11, %v1772_v8  ;;  %v948_v7 = vld [vmem:[#allocation4 + $0x30] sm:$0xff]  ;;  %v949_v9 = vld [vmem:[#allocation4 + $0x38] sm:$0xff] }
 0x1e7   : > { %v1778_v15 = vpop.eup %1777 }
 0x1e8   : > { %v1780_v16 = vpop.eup %1779  ;;  %v922_v17 = vadd.f32 %v1772_v8, %v921_v13  ;;  %v967_v18 = vpack.c.bf16 %v1778_v15, %v1776_v12  ;;  %v946_v8 = vld [vmem:[#allocation4 + $0x20] sm:$0xff] }
 0x1e9   : > { %v1782_v19 = vpop.eup %1781  ;;  %1612 = vmatpush3.bf16.msra.mxu1 %v965_v10  ;;  %v962_v10 = vmul.f32 %v2141_v61, %v948_v7  ;;  %v960_v13 = vmul.f32 %v2141_v61, %v946_v8 }
 0x1ea   : > { %v1784_v20 = vpop.eup %1783  ;;  %v923_v21 = vadd.f32 %v1774_v11, %v922_v17  ;;  %1613 = vmatprep.subr.bf16.mxu1 %v966_v14  ;;  %v968_v22 = vpack.c.bf16 %v1782_v19, %v1780_v16  ;;  %v947_v11 = vld [vmem:[#allocation4 + $0x28] sm:$0xff] }
 0x1eb   : > { %v1786_v23 = vpop.eup %1785 }
 0x1ec   : > { %v1788_v24 = vpop.eup %1787  ;;  %v924_v25 = vadd.f32 %v1776_v12, %v923_v21  ;;  %v969_v26 = vpack.c.bf16 %v1786_v23, %v1784_v20 }
 0x1ed   : > { %v1790_v28 = vpop.eup %1789  ;;  %1614 = vmatpush3.bf16.msra.mxu1 %v966_v14 }
 0x1ee   : > { %v1792_v29 = vpop.eup %1791  ;;  %v925_v30 = vadd.f32 %v1778_v15, %v924_v25  ;;  %1615 = vmatprep.subr.bf16.mxu1 %v967_v18  ;;  %v970_v31 = vpack.c.bf16 %v1790_v28, %v1788_v24  ;;  %v1797_v25 = vld [vmem:[%s2265_s4] sm:$0xff] (!%p1539_p3)  }
 0x1ef   : > { %v1794_v32 = vpop.eup %1793  ;;  %1641 = vmatprep.mubr.msk.bf16.mxu0 (!%p1539_p3), %vm715_vm0, %v1797_v25 }
 0x1f0   : > { %v926_v33 = vadd.f32 %v1780_v16, %v925_v30  ;;  %v971_v34 = vpack.c.bf16 %v1794_v32, %v1792_v29  ;;  %v963_v16 = vmul.f32 %v2141_v61, %v949_v9  ;;  %v1119_v30 = vld [vmem:[%s2266_s5 + $0x8] sm:$0xff] (!%p1539_p3) }
 0x1f1   : > { %1616 = vmatpush3.bf16.msra.mxu1 %v967_v18 }
 0x1f2   : > { %v927_v35 = vadd.f32 %v1782_v19, %v926_v33  ;;  %1617 = vmatprep.subr.bf16.mxu1 %v968_v22  ;;  %v961_v19 = vmul.f32 %v2141_v61, %v947_v11  ;;  %v1798_v61 = vld [vmem:[%s2265_s4 + $0x10] sm:$0xff] (!%p1539_p3)  }
 0x1f4   : > { %v928_v36 = vadd.f32 %v1784_v20, %v927_v35 }
 0x1f5   : > { %1618 = vmatpush3.bf16.msra.mxu1 %v968_v22 }
 0x1f6   : > { %v929_v37 = vadd.f32 %v1786_v23, %v928_v36  ;;  %1619 = vmatprep.subr.bf16.mxu1 %v969_v26 }
 0x1f8   : > { %v930_v38 = vadd.f32 %v1788_v24, %v929_v37  ;;  %v1893_v24 = vmov (!%p1539_p3), 0  }
 0x1f9   : > { %1620 = vmatpush3.bf16.msra.mxu1 %v969_v26  ;;  %1796 = vset.pattern.permute.xlu1 (!%p1539_p3), %v1893_v24  ;;  %v1120_v26 = vld [vmem:[%s2266_s5 + $0x10] sm:$0xff] (!%p1539_p3) }
 0x1fa   : > { %v931_v39 = vadd.f32 %v1790_v28, %v930_v38  ;;  %1621 = vmatprep.subr.bf16.mxu1 %v970_v31  ;;  %1795 = vset.pattern.permute.xlu0 (!%p1539_p3), %v1893_v24  ;;  %v1118_v28 = vld [vmem:[%s2266_s5] sm:$0xff] (!%p1539_p3)  ;;  %v1264_v24 = vld [vmem:[%s2076_s10 + $0x8] sm:$0xff] (!%p1539_p3) }
 0x1fb   : > { %1138 = vperm.xlu1 (!%p1539_p3), %1796, %v1120_v26   ;;  %1128 = vperm.xlu0 (!%p1539_p3), %1795, %v1118_v28  }
 0x1fc   : > { %v932_v40 = vadd.f32 %v1792_v29, %v931_v39  ;;  %v1121_v29 = vld [vmem:[%s2266_s5 + $0x18] sm:$0xff] (!%p1539_p3)  ;;  %v1123_v39 = vld [vmem:[%s2266_s5 + $0x28] sm:$0xff] (!%p1539_p3) }
 0x1fd   : > { %1622 = vmatpush3.bf16.msra.mxu1 %v970_v31 }
 0x1fe   : > { %v933_v41 = vadd.f32 %v1794_v32, %v932_v40  ;;  %1623 = vmatprep.subr.bf16.mxu1 %v971_v34  ;;  %v1122_v40 = vld [vmem:[%s2266_s5 + $0x20] sm:$0xff] (!%p1539_p3) }
 0x1ff   : > { %1143 = vperm.xlu1 (!%p1539_p3), %1796, %v1121_v29   ;;  %1133 = vperm.xlu0 (!%p1539_p3), %1795, %v1119_v30  }
 0x200   : > { %v934_v42 = vrot.slane %v933_v41, 4 }
 0x201   : > { %1624 = vmatpush3.bf16.msra.mxu1 %v971_v34 }
 0x202   : > { %v935_v45 = vadd.f32 %v934_v42, %v933_v41 }
 0x203   : > { %1153 = vperm.xlu1 (!%p1539_p3), %1796, %v1123_v39   ;;  %1148 = vperm.xlu0 (!%p1539_p3), %1795, %v1122_v40  }
 0x204   : > { %v936_v46 = vrot.slane %v935_v45, 2  ;;  %1626 = vmatmul.mubr.bf16.vlgmr.msra.gmra.mrb[0].mxu1 %v1758_v43 }
 0x205   : > { %1629 = vmatprep.mubr.bf16.mxu1 %v1759_v44 }
 0x206   : > { %v937_v47 = vadd.f32 %v936_v46, %v935_v45 }
 0x208   : > { %v938_v49 = vrot.slane %v937_v47, 1 }
 0x20a   : > { %v939_v52 = vadd.f32 %v938_v49, %v937_v47 }
 0x20c   : > { %v940_v53 = vadd.f32 %v939_v52, %v918_v51  ;;  %1630 = vmatmul.mubr.bf16.gmra.mrb[4].mxu1 %v1760_v50  ;;  %v1125_v50 = vld [vmem:[%s2266_s5 + $0x38] sm:$0xff] (!%p1539_p3)  ;;  %v1124_v51 = vld [vmem:[%s2266_s5 + $0x30] sm:$0xff] (!%p1539_p3) }
 0x20d   : > { %1645 = vmatprep.mubr.msk.bf16.mxu1 (!%p1539_p3), %vm715_vm0, %v1798_v61  ;;  %1163 = vperm.xlu1 (!%p1539_p3), %1796, %v1125_v50   ;;  %v1268_v61 = vld [vmem:[%s2076_s10 + $0x28] sm:$0xff] (!%p1539_p3) }
 0x20e   : > { %941 = vst [vmem:[#allocation3] sm:$0x1] %v940_v53  ;;  %1158 = vperm.xlu0 (!%p1539_p3), %1795, %v1124_v51  }
 0x215   : > { %v1082_v23 = vld [vmem:[#allocation3] sm:$0x1] (!%p1539_p3) }
 0x216   : > { %1801 = vrcp.f32 (!%p1539_p3), %v1082_v23 }
 0x220   : > { %v1802_v32 = vpop.eup (!%p1539_p3), %1801 }
 0x221   : > { %v1096_v36 = vrot.slane (!%p1539_p3), %v1802_v32, %v2125_v27 }
 0x27a   : > { %v1139_v59 = vpop.permute.xlu1 (!%p1539_p3), %1138 }
 0x2d7   : > { %v1627_v60 = vpop.f32.mrb[0].mxu1 }
 0x2d8   : > { %v1063_v63 = vadd.f32 %v1627_v60, %v958_v57  ;;  %v1030_v0 = vpop.f32.mrb[1].mxu1  ;;  %v1800_v57 = vld [vmem:[%s2265_s4 + $0x18] sm:$0xff] (!%p1539_p3)   ;;  %v1129_v60 = vpop.permute.xlu0 (!%p1539_p3), %1128 }
 0x2d9   : > { %v1061_v2 = vadd.f32 %v1030_v0, %v956_v62  ;;  %v1628_v3 = vpop.f32.mrb[2].mxu1  ;;  %v1144_v62 = vpop.permute.xlu1 (!%p1539_p3), %1143 }
 0x2da   : > { %1071 = vst [vmem:[#allocation4 + $0x10] sm:$0xff] %v1063_v63  ;;  %v1064_v4 = vadd.f32 %v1628_v3, %v959_v1  ;;  %v1033_v5 = vpop.f32.mrb[3].mxu1 }
 0x2db   : > { %1069 = vst [vmem:[#allocation4] sm:$0xff] %v1061_v2  ;;  %v1062_v6 = vadd.f32 %v1033_v5, %v957_v58 }
 0x2dc   : > { %1072 = vst [vmem:[#allocation4 + $0x18] sm:$0xff] %v1064_v4  ;;  %v1134_v63 = vpop.permute.xlu0 (!%p1539_p3), %1133  ;;  %v1265_v4 = vld [vmem:[%s2076_s10 + $0x10] sm:$0xff] (!%p1539_p3) }
 0x2dd   : > { %1070 = vst [vmem:[#allocation4 + $0x8] sm:$0xff] %v1062_v6  ;;  %v1154_v0 = vpop.permute.xlu1 (!%p1539_p3), %1153  ;;  %v1269_v6 = vld [vmem:[%s2076_s10 + $0x30] sm:$0xff] (!%p1539_p3) }
 0x2df   : > { %v1631_v12 = vpop.f32.mrb[4].mxu1  ;;  %1081 = sbr.rel (%p1539_p3) target bundleno = 981 (0x3d5), region = 213 }
 0x2e0   : > { %v1067_v14 = vadd.f32 %v1631_v12, %v962_v10  ;;  %v1046_v15 = vpop.f32.mrb[5].mxu1  ;;  %v1149_v1 = vpop.permute.xlu0 (!%p1539_p3), %1148  ;;  %v1263_v10 = vld [vmem:[%s2076_s10] sm:$0xff] (!%p1539_p3) }
 0x2e1   : > { %v1065_v17 = vadd.f32 %v1046_v15, %v960_v13  ;;  %v1632_v18 = vpop.f32.mrb[6].mxu1  ;;  %v1086_v34 = vld [vmem:[#allocation4 + $0x10] sm:$0xff] (!%p1539_p3)  ;;  %v1164_v2 = vpop.permute.xlu1 (!%p1539_p3), %1163  ;;  %v1267_v12 = vld [vmem:[%s2076_s10 + $0x20] sm:$0xff] (!%p1539_p3) }
 0x2e2   : > { %1075 = vst [vmem:[#allocation4 + $0x30] sm:$0xff] %v1067_v14  ;;  %v1068_v20 = vadd.f32 %v1632_v18, %v963_v16  ;;  %v1049_v21 = vpop.f32.mrb[7].mxu1  ;;  %v1084_v31 = vld [vmem:[#allocation4] sm:$0xff] (!%p1539_p3)  ;;  %v1100_v43 = vmul.f32 (!%p1539_p3), %v1096_v36, %v1086_v34  ;;  %v1266_v16 = vld [vmem:[%s2076_s10 + $0x18] sm:$0xff] (!%p1539_p3) }
 0x2e3   : > { %1073 = vst [vmem:[#allocation4 + $0x20] sm:$0xff] %v1065_v17  ;;  %v1066_v22 = vadd.f32 %v1049_v21, %v961_v19  ;;  %v1087_v35 = vld [vmem:[#allocation4 + $0x18] sm:$0xff] (!%p1539_p3)  ;;  %v1098_v41 = vmul.f32 (!%p1539_p3), %v1096_v36, %v1084_v31 }
 0x2e4   : > { %1076 = vst [vmem:[#allocation4 + $0x38] sm:$0xff] %v1068_v20  ;;  %v1085_v33 = vld [vmem:[#allocation4 + $0x8] sm:$0xff] (!%p1539_p3)  ;;  %v1101_v44 = vmul.f32 (!%p1539_p3), %v1096_v36, %v1087_v35  ;;  %v1159_v3 = vpop.permute.xlu0 (!%p1539_p3), %1158  ;;  %v1270_v18 = vld [vmem:[%s2076_s10 + $0x38] sm:$0xff] (!%p1539_p3) }
 0x2e5   : > { %1074 = vst [vmem:[#allocation4 + $0x28] sm:$0xff] %v1066_v22  ;;  %v1099_v42 = vmul.f32 (!%p1539_p3), %v1096_v36, %v1085_v33 }
 0x2e6   : > { %v1107_v47 = vpack.c.bf16 %v1101_v44, %v1100_v43 }
 0x2e7   : > { %v1106_v46 = vpack.c.bf16 %v1099_v42, %v1098_v41 }
 0x2e9   : > { %v1090_v48 = vld [vmem:[#allocation4 + $0x30] sm:$0xff]  ;;  %1633 = vmatprep.subr.bf16.mxu0 %v1106_v46  ;;  %1649 = vmatprep.subr.bf16.mxu1 %v1106_v46 }
 0x2ea   : > { %v1088_v37 = vld [vmem:[#allocation4 + $0x20] sm:$0xff]  ;;  %1634 = vmatpush3.bf16.msra.mxu0 %v1106_v46  ;;  %1653 = vmatpush3.bf16.msra.mxu1 %v1106_v46  ;;  %v1104_v53 = vmul.f32 %v1096_v36, %v1090_v48 }
 0x2eb   : > { %v1102_v45 = vmul.f32 %v1096_v36, %v1088_v37  ;;  %v1091_v49 = vld [vmem:[#allocation4 + $0x38] sm:$0xff]  ;;  %1635 = vmatprep.subr.bf16.mxu0 %v1107_v47  ;;  %1650 = vmatprep.subr.bf16.mxu1 %v1107_v47 }
 0x2ec   : > { %v1089_v38 = vld [vmem:[#allocation4 + $0x28] sm:$0xff]  ;;  %v1105_v54 = vmul.f32 %v1096_v36, %v1091_v49 }
 0x2ed   : > { %v1103_v27 = vmul.f32 %v1096_v36, %v1089_v38 }
 0x2ee   : > { %1636 = vmatpush3.bf16.msra.mxu0 %v1107_v47  ;;  %1654 = vmatpush3.bf16.msra.mxu1 %v1107_v47  ;;  %v1109_v55 = vpack.c.bf16 %v1105_v54, %v1104_v53 }
 0x2ef   : > { %v1108_v52 = vpack.c.bf16 %v1103_v27, %v1102_v45 }
 0x2f1   : > { %1637 = vmatprep.subr.bf16.mxu0 %v1108_v52  ;;  %1651 = vmatprep.subr.bf16.mxu1 %v1108_v52 }
 0x2f2   : > { %1638 = vmatpush3.bf16.msra.mxu0 %v1108_v52  ;;  %1655 = vmatpush3.bf16.msra.mxu1 %v1108_v52 }
 0x2f3   : > { %1639 = vmatprep.subr.bf16.mxu0 %v1109_v55  ;;  %1652 = vmatprep.subr.bf16.mxu1 %v1109_v55 }
 0x2f6   : > { %1640 = vmatpush3.bf16.msra.mxu0 %v1109_v55  ;;  %1656 = vmatpush3.bf16.msra.mxu1 %v1109_v55 }
 0x2f9   : > { %1642 = vmatmul.mubr.msk.bf16.vlgmr.msra.gmra.mrb[0].mxu0 %vm715_vm0, %v1799_v56  ;;  %1646 = vmatmul.mubr.msk.bf16.vlgmr.msra.gmra.mrb[0].mxu1 %vm715_vm0, %v1800_v57 }
 0x3cc   : > { %v1643_v58 = vpop.f32.mrb[0].mxu0  ;;  %v1647_v5 = vpop.f32.mrb[0].mxu1 }
 0x3cd   : > { %v1241_v7 = vadd.f32 %v1643_v58, %v1139_v59  ;;  %v1257_v8 = vadd.f32 %v1647_v5, %v1159_v3  ;;  %v1232_v9 = vpop.f32.mrb[1].mxu0  ;;  %v1248_v11 = vpop.f32.mrb[1].mxu1 }
 0x3ce   : > { %v1233_v13 = vadd.f32 %v1232_v9, %v1129_v60  ;;  %v1249_v14 = vadd.f32 %v1248_v11, %v1149_v1  ;;  %v1644_v15 = vpop.f32.mrb[2].mxu0  ;;  %v1648_v17 = vpop.f32.mrb[2].mxu1 }
 0x3cf   : > { %v1273_v19 = vadd.f32 %v1265_v4, %v1241_v7  ;;  %v1277_v20 = vadd.f32 %v1269_v6, %v1257_v8  ;;  %v1244_v21 = vadd.f32 %v1644_v15, %v1144_v62  ;;  %v1260_v22 = vadd.f32 %v1648_v17, %v1164_v2  ;;  %v1235_v23 = vpop.f32.mrb[3].mxu0  ;;  %v1251_v25 = vpop.f32.mrb[3].mxu1 }
 0x3d0   : > { %v1271_v26 = vadd.f32 %v1263_v10, %v1233_v13  ;;  %v1275_v28 = vadd.f32 %v1267_v12, %v1249_v14  ;;  %v1236_v29 = vadd.f32 %v1235_v23, %v1134_v63  ;;  %v1252_v30 = vadd.f32 %v1251_v25, %v1154_v0 }
 0x3d1   : > { %1281 = vst [vmem:[%s2078_s20 + $0x10] sm:$0xff] %v1273_v19  ;;  %1285 = vst [vmem:[%s2078_s20 + $0x30] sm:$0xff] %v1277_v20  ;;  %v1274_v31 = vadd.f32 %v1266_v16, %v1244_v21  ;;  %v1278_v32 = vadd.f32 %v1270_v18, %v1260_v22 }
 0x3d2   : > { %1279 = vst [vmem:[%s2078_s20] sm:$0xff] %v1271_v26  ;;  %1283 = vst [vmem:[%s2078_s20 + $0x20] sm:$0xff] %v1275_v28  ;;  %v1272_v33 = vadd.f32 %v1264_v24, %v1236_v29  ;;  %v1276_v34 = vadd.f32 %v1268_v61, %v1252_v30 }
 0x3d3   : > { %1282 = vst [vmem:[%s2078_s20 + $0x18] sm:$0xff] %v1274_v31  ;;  %1286 = vst [vmem:[%s2078_s20 + $0x38] sm:$0xff] %v1278_v32 }
 0x3d4   : > { %1280 = vst [vmem:[%s2078_s20 + $0x8] sm:$0xff] %v1272_v33  ;;  %1284 = vst [vmem:[%s2078_s20 + $0x28] sm:$0xff] %v1276_v34 }
 0x3d5 PF: > { %1293 = sbr.rel (!%p2020_p9) target bundleno = 994 (0x3e2), region = 217  ;;  %s2279_s10 = sld [smem:[#allocation10_spill]] (%p2020_p9) }
 0x3d6   : > { %s1549_s6 = sshll.u32 (%p2020_p9), %s1873_s27, 4  ;;  %s2280_s14 = sld [smem:[#allocation14_spill]] (%p2020_p9) }
 0x3d8   : > { %v1343_v37 = vld [vmem:[%s2078_s20 + $0x10] sm:$0xff] (%p2020_p9) }
 0x3d9   : > { %v1339_v35 = vld [vmem:[%s2078_s20] sm:$0xff] (%p2020_p9)  ;;  %v1351_v41 = vld [vmem:[%s2078_s20 + $0x30] sm:$0xff] (%p2020_p9) }
 0x3da   : > { %v1345_v38 = vld [vmem:[%s2078_s20 + $0x18] sm:$0xff] (%p2020_p9)  ;;  %v1347_v39 = vld [vmem:[%s2078_s20 + $0x20] sm:$0xff] (%p2020_p9) }
 0x3db   : > { %v1341_v36 = vld [vmem:[%s2078_s20 + $0x8] sm:$0xff] (%p2020_p9)  ;;  %s1295_s26 = sadd.s32 (%p2020_p9), %s2279_s10, %s1549_s6  ;;  %v1353_v42 = vld [vmem:[%s2078_s20 + $0x38] sm:$0xff] (%p2020_p9) }
 0x3dc   : > { %v1349_v40 = vld [vmem:[%s2078_s20 + $0x28] sm:$0xff]  ;;  %s1550_s17 = sshll.u32 %s1295_s26, 3 }
 0x3dd   : > { %s1297_s13 = scalar_lea.vmem %s2280_s14, %s1550_s17 }
 0x3de   : > { %1340 = vst [vmem:[%s1297_s13] sm:$0xff] %v1339_v35  ;;  %1342 = vst [vmem:[%s1297_s13 + $0x10] sm:$0xff] %v1341_v36 }
 0x3df   : > { %1344 = vst [vmem:[%s1297_s13 + $0x20] sm:$0xff] %v1343_v37  ;;  %1346 = vst [vmem:[%s1297_s13 + $0x30] sm:$0xff] %v1345_v38 }
 0x3e0   : > { %1348 = vst [vmem:[%s1297_s13 + $0x40] sm:$0xff] %v1347_v39  ;;  %1350 = vst [vmem:[%s1297_s13 + $0x50] sm:$0xff] %v1349_v40 }
 0x3e1   : > { %1352 = vst [vmem:[%s1297_s13 + $0x60] sm:$0xff] %v1351_v41  ;;  %1354 = vst [vmem:[%s1297_s13 + $0x70] sm:$0xff] %v1353_v42 }
 0x3e2 PF: > { %s16_s7 = sadd.s32 1, %s1889_s7   ;;  %s2281_s20 = sld [smem:[#allocation11_spill]] }
 0x3e3   : > { %p13_p4 = scmp.ge.s32.totalorder %s16_s7, 10   ;;  %s2282_s12 = sld [smem:[#allocation12_spill]] }
 0x3e4   : > { %s2283_s18 = sld [smem:[#allocation13_spill]]  ;;  %s2284_s21 = smov %s1853_s22 }
 0x3e5   : > { %s2285_s22 = smov %s2031_s9  ;;  %s2286_s23 = smov %s1861_s24 }
 0x3e6   : > { %s2287_s24 = smov %s2028_s11  ;;  %s2288_s25 = smov %s1877_s28 }
 0x3e7   : > { %s2289_s26 = smov %s1881_s29  ;;  %s2290_s27 = smov %s1885_s30 }
 0x3e8   : > { %s2291_s28 = smov %s2281_s20  ;;  %15 = sbr.rel (!%p13_p4) target bundleno = 8 (0x8), region = 310 }
 0x3e9   : > { %s2292_s29 = smov %s2282_s12 }
 0x3ea   : > { %s2293_s30 = smov %s2283_s18 }

</bundles_post_ra>
